<compile_context>
chip_gen: v5e
topology: v5e:2x2
jax: 0.10.0
libtpu: 0.0.40
codegen_flags: <defaults>
</compile_context>

<pallas_src>
import functools

import jax
import jax.numpy as jnp
import numpy as np
from jax.experimental import pallas as pl
from jax.experimental.pallas import tpu as pltpu

EPS = 1e-5  # nn.InstanceNorm2d default (affine=False, track_running_stats=False)

_TAPS = tuple((dh, dw) for dh in range(3) for dw in range(3))


def _zero_halo(pad_ref):
    """Zero only the 1-pixel halo of a (B, Hp+2, Wp+2, C) padded buffer."""
    B, Hp2, Wp2, C = pad_ref.shape
    z_row = jnp.zeros((B, 1, Wp2, C), pad_ref.dtype)
    z_col = jnp.zeros((B, Hp2, 1, C), pad_ref.dtype)
    pad_ref[:, 0:1, :, :] = z_row
    pad_ref[:, Hp2 - 1:Hp2, :, :] = z_row
    pad_ref[:, :, 0:1, :] = z_col
    pad_ref[:, :, Wp2 - 1:Wp2, :] = z_col


def _conv3x3_as_matmul(pad_ref, w_ref, *, Hp, Wp, Cin):
    """3x3 'same' conv as a single (M, 9*Cin) x (9*Cin, Cout) MXU matmul.

    pad_ref : (B, Hp+2, Wp+2, Cin) zero-haloed input (VMEM scratch)
    w_ref   : (9*Cin, Cout)        weight, pre-reshaped in the wrapper
    The im2col patch is built in registers (no VMEM staging round-trip).
    """
    B = pad_ref.shape[0]
    M = B * Hp * Wp
    cols = []
    for (dh, dw) in _TAPS:
        win = pad_ref[:, dh:dh + Hp, dw:dw + Wp, :]       # (B, Hp, Wp, Cin)
        cols.append(win.reshape(M, Cin))
    patch = jnp.concatenate(cols, axis=-1)                # (M, 9*Cin)
    return jnp.dot(patch, w_ref[...],
                   preferred_element_type=jnp.float32)    # (M, Cout) f32


def _inorm_relu(x, axis, inv_n):
    """InstanceNorm (biased variance, one-pass fused stats) + ReLU."""
    s = jnp.sum(x, axis=axis, keepdims=True)
    q = jnp.sum(x * x, axis=axis, keepdims=True)
    mean = s * inv_n
    var = q * inv_n - mean * mean
    return jnp.maximum((x - mean) * jax.lax.rsqrt(var + EPS), 0.0)


def _forward_conv_kernel(x_ref, w1_ref, w2_ref, o_ref,
                         pad1_ref, pad2_ref,
                         *, b_blk, Hp, Wp, Cin, Cmid, Cout):
    """One block of `b_blk` batch samples per grid step.

    x_ref  : (b_blk, 4, Hp, Wp, Cin)  the 4 taps of each 2x2 max-pool window
    w1_ref : (9*Cin, Cmid)            conv1 weight (im2col-folded)
    w2_ref : (9*Cmid, Cout)           conv2 weight (im2col-folded)
    o_ref  : (b_blk, Cout, Hp*Wp)     lane-dense output slab (already NCHW)
    """
    hw = Hp * Wp
    inv_hw = 1.0 / float(hw)

    # ---- MaxPool2d(2): elementwise max over the 4 pre-arranged taps --------
    x = x_ref[...]                                        # (b_blk,4,Hp,Wp,Cin)
    pooled = jnp.maximum(jnp.maximum(x[:, 0], x[:, 1]),
                         jnp.maximum(x[:, 2], x[:, 3]))   # (b_blk,Hp,Wp,Cin)

    # ---- conv1: 3x3, padding=1, no bias — one wide-K matmul ----------------
    _zero_halo(pad1_ref)
    pad1_ref[:, 1:Hp + 1, 1:Wp + 1, :] = pooled.astype(pad1_ref.dtype)
    acc1 = _conv3x3_as_matmul(pad1_ref, w1_ref,
                              Hp=Hp, Wp=Wp, Cin=Cin)      # (b_blk*hw, Cmid)

    # ---- InstanceNorm2d + ReLU (per sample, per channel over spatial) ------
    y1 = _inorm_relu(acc1.reshape(b_blk, hw, Cmid), axis=1, inv_n=inv_hw)

    # ---- conv2: 3x3, padding=1, no bias — one wide-K matmul ----------------
    _zero_halo(pad2_ref)
    pad2_ref[:, 1:Hp + 1, 1:Wp + 1, :] = (
        y1.reshape(b_blk, Hp, Wp, Cmid).astype(pad2_ref.dtype))
    acc2 = _conv3x3_as_matmul(pad2_ref, w2_ref,
                              Hp=Hp, Wp=Wp, Cin=Cmid)     # (b_blk*hw, Cout)

    # ---- InstanceNorm2d + ReLU in (Cout, hw) orientation: lane-dense math
    # and a lane-dense store (last output dim = Hp*Wp). -----------------------
    acc2_t = jnp.transpose(acc2.reshape(b_blk, hw, Cout), (0, 2, 1))
    y2 = _inorm_relu(acc2_t, axis=2, inv_n=inv_hw)        # (b_blk, Cout, hw)
    o_ref[...] = y2.astype(o_ref.dtype)


def _pick_batch_block(n):
    """Largest divisor of n that still leaves >= 2 grid steps (capped at 8)."""
    if n <= 1:
        return 1
    best = 1
    for b in range(1, n // 2 + 1):
        if n % b == 0 and n // b >= 2:
            best = b
    return min(best, 8)


def forward_conv(x_nchw, w1, w2, b_blk=None):
    """Pallas implementation of Forward_conv.forward.

    x_nchw: (N, Cin, H, W)     float32
    w1    : (3, 3, Cin, Cmid)  conv1 weight (HWIO)
    w2    : (3, 3, Cmid, Cout) conv2 weight (HWIO)
    returns (N, Cout, H//2, W//2)
    """
    N, Cin, H, W = x_nchw.shape
    assert H % 2 == 0 and W % 2 == 0
    Hp, Wp = H // 2, W // 2
    hw = Hp * Wp
    Cmid = w1.shape[3]
    Cout = w2.shape[3]

    if b_blk is None:
        b_blk = _pick_batch_block(N)
    assert N % b_blk == 0
    grid = (N // b_blk,)

    # Wrapper glue: NCHW -> NHWC, expose the 2x2 pooling taps as an axis of
    # size 4: (N, 4, Hp, Wp, Cin).  Pure layout ops, handled by XLA.
    x_nhwc = jnp.transpose(x_nchw, (0, 2, 3, 1))
    x_taps = (x_nhwc.reshape(N, Hp, 2, Wp, 2, Cin)
              .transpose(0, 2, 4, 1, 3, 5)
              .reshape(N, 4, Hp, Wp, Cin))

    # Fold the 3x3 taps into the contraction dim once, in the wrapper.
    # K order = (dh, dw, ci), matching the in-kernel patch assembly order.
    w1_mat = w1.reshape(9 * Cin, Cmid)
    w2_mat = w2.reshape(9 * Cmid, Cout)

    kernel = functools.partial(_forward_conv_kernel, b_blk=b_blk,
                               Hp=Hp, Wp=Wp, Cin=Cin, Cmid=Cmid, Cout=Cout)

    out_flat = pl.pallas_call(
        kernel,
        out_shape=jax.ShapeDtypeStruct((N, Cout, hw), jnp.float32),
        grid_spec=pltpu.PrefetchScalarGridSpec(
            num_scalar_prefetch=0,
            grid=grid,
            in_specs=[
                pl.BlockSpec((b_blk, 4, Hp, Wp, Cin),
                             lambda n: (n, 0, 0, 0, 0)),
                pl.BlockSpec((9 * Cin, Cmid), lambda n: (0, 0)),
                pl.BlockSpec((9 * Cmid, Cout), lambda n: (0, 0)),
            ],
            out_specs=pl.BlockSpec((b_blk, Cout, hw), lambda n: (n, 0, 0)),
            scratch_shapes=[
                pltpu.VMEM((b_blk, Hp + 2, Wp + 2, Cin), jnp.float32),
                pltpu.VMEM((b_blk, Hp + 2, Wp + 2, Cmid), jnp.float32),
            ],
        ),
        compiler_params=pltpu.CompilerParams(
            dimension_semantics=("parallel",),
            vmem_limit_bytes=64 * 1024 * 1024,
        ),
    )(x_taps, w1_mat, w2_mat)

    # (N, Cout, Hp*Wp) is already NCHW-flat: just reshape.
    return out_flat.reshape(N, Cout, Hp, Wp)


def forward_conv_reference(x_nchw, w1, w2):
    """Pure-JAX reference matching the PyTorch semantics (NCHW)."""
    N, C, H, W = x_nchw.shape
    xp = x_nchw.reshape(N, C, H // 2, 2, W // 2, 2).max(axis=(3, 5))

    def conv(x, w_hwio):
        w_oihw = jnp.transpose(w_hwio, (3, 2, 0, 1))
        return jax.lax.conv_general_dilated(
            x, w_oihw, window_strides=(1, 1), padding=((1, 1), (1, 1)),
            dimension_numbers=("NCHW", "OIHW", "NCHW"))

    def inorm_relu(x):
        m = x.mean(axis=(2, 3), keepdims=True)
        v = ((x - m) ** 2).mean(axis=(2, 3), keepdims=True)
        return jnp.maximum((x - m) / jnp.sqrt(v + EPS), 0.0)

    y = inorm_relu(conv(xp, w1))
    y = inorm_relu(conv(y, w2))
    return y


if __name__ == "__main__":
    # Small shapes consistent with the module: N=2, Cin=4, Cout=8, H=W=16.
    N, Cin, Cout, H, W = 2, 4, 8, 16, 16
    Cmid = Cout  # DoubleConv default: mid_channels = out_channels

    key = jax.random.PRNGKey(0)
    kx, k1, k2 = jax.random.split(key, 3)

    x = jax.random.normal(kx, (N, Cin, H, W), dtype=jnp.float32)
    # Deterministic Kaiming-style init for the two 3x3 conv weights (HWIO).
    w1 = jax.random.normal(k1, (3, 3, Cin, Cmid), dtype=jnp.float32) * np.sqrt(
        2.0 / (9 * Cin))
    w2 = jax.random.normal(k2, (3, 3, Cmid, Cout), dtype=jnp.float32) * np.sqrt(
        2.0 / (9 * Cmid))

    out = forward_conv(x, w1, w2)
    out = jax.block_until_ready(out)

    ref = forward_conv_reference(x, w1, w2)
    np.testing.assert_allclose(np.asarray(out), np.asarray(ref),
                               rtol=5e-4, atol=5e-4)
    assert out.shape == (N, Cout, H // 2, W // 2)

    print("KERNEL_OK")
</pallas_src>

<mosaic_0001>
module attributes {stable_mosaic.version = 11 : i64} {
  func.func @_forward_conv_kernel(%arg0: i32, %arg1: memref<1x4x8x8x4xf32, #tpu.memory_space<vmem>>, %arg2: memref<36x8xf32, #tpu.memory_space<vmem>>, %arg3: memref<72x8xf32, #tpu.memory_space<vmem>>, %arg4: memref<1x8x64xf32, #tpu.memory_space<vmem>>, %arg5: memref<1x10x10x4xf32, #tpu.memory_space<vmem>>, %arg6: memref<1x10x10x8xf32, #tpu.memory_space<vmem>>) attributes {dimension_semantics = [#tpu.dimension_semantics<parallel>], iteration_bounds = array<i64: 2>, scalar_prefetch = 0 : i64, scratch_operands = 2 : i64, tpu.core_type = #tpu.core_type<tc>, window_params = [{transform_indices = @transform_0, window_bounds = array<i64: 1, 4, 8, 8, 4>}, {pipeline_mode = #tpu.pipeline_mode<synchronous>, transform_indices = @transform_1, window_bounds = array<i64: 36, 8>}, {pipeline_mode = #tpu.pipeline_mode<synchronous>, transform_indices = @transform_2, window_bounds = array<i64: 72, 8>}, {transform_indices = @transform_3, window_bounds = array<i64: 1, 8, 64>}]} {
    %c0 = arith.constant 0 : index
    %c0_0 = arith.constant 0 : index
    %c0_1 = arith.constant 0 : index
    %c0_2 = arith.constant 0 : index
    %c0_3 = arith.constant 0 : index
    %0 = vector.load %arg1[%c0, %c0_0, %c0_1, %c0_2, %c0_3] : memref<1x4x8x8x4xf32, #tpu.memory_space<vmem>>, vector<1x4x8x8x4xf32>
    %1 = vector.extract_strided_slice %0 {offsets = [0, 0, 0, 0, 0], sizes = [1, 1, 8, 8, 4], strides = [1, 1, 1, 1, 1]} : vector<1x4x8x8x4xf32> to vector<1x1x8x8x4xf32>
    %2 = vector.shape_cast %1 : vector<1x1x8x8x4xf32> to vector<1x8x8x4xf32>
    %3 = vector.extract_strided_slice %0 {offsets = [0, 1, 0, 0, 0], sizes = [1, 1, 8, 8, 4], strides = [1, 1, 1, 1, 1]} : vector<1x4x8x8x4xf32> to vector<1x1x8x8x4xf32>
    %4 = vector.shape_cast %3 : vector<1x1x8x8x4xf32> to vector<1x8x8x4xf32>
    %5 = arith.maximumf %2, %4 : vector<1x8x8x4xf32>
    %6 = vector.extract_strided_slice %0 {offsets = [0, 2, 0, 0, 0], sizes = [1, 1, 8, 8, 4], strides = [1, 1, 1, 1, 1]} : vector<1x4x8x8x4xf32> to vector<1x1x8x8x4xf32>
    %7 = vector.shape_cast %6 : vector<1x1x8x8x4xf32> to vector<1x8x8x4xf32>
    %8 = vector.extract_strided_slice %0 {offsets = [0, 3, 0, 0, 0], sizes = [1, 1, 8, 8, 4], strides = [1, 1, 1, 1, 1]} : vector<1x4x8x8x4xf32> to vector<1x1x8x8x4xf32>
    %9 = vector.shape_cast %8 : vector<1x1x8x8x4xf32> to vector<1x8x8x4xf32>
    %10 = arith.maximumf %7, %9 : vector<1x8x8x4xf32>
    %11 = arith.maximumf %5, %10 : vector<1x8x8x4xf32>
    %cst = arith.constant 0.000000e+00 : f32
    %12 = vector.broadcast %cst : f32 to vector<1x1x10x4xf32>
    %cst_4 = arith.constant 0.000000e+00 : f32
    %13 = vector.broadcast %cst_4 : f32 to vector<1x10x1x4xf32>
    %c0_5 = arith.constant 0 : index
    %c0_6 = arith.constant 0 : index
    %c0_7 = arith.constant 0 : index
    %c0_8 = arith.constant 0 : index
    %14 = vector.load %arg5[%c0_5, %c0_6, %c0_7, %c0_8] : memref<1x10x10x4xf32, #tpu.memory_space<vmem>>, vector<1x1x10x4xf32>
    tpu.vector_store %arg5[%c0_5, %c0_6, %c0_7, %c0_8], %12 {strides = array<i32>} : memref<1x10x10x4xf32, #tpu.memory_space<vmem>>, vector<1x1x10x4xf32>,
    %c0_9 = arith.constant 0 : index
    %c9 = arith.constant 9 : index
    %c0_10 = arith.constant 0 : index
    %c0_11 = arith.constant 0 : index
    %15 = vector.load %arg5[%c0_9, %c9, %c0_10, %c0_11] : memref<1x10x10x4xf32, #tpu.memory_space<vmem>>, vector<1x1x10x4xf32>
    tpu.vector_store %arg5[%c0_9, %c9, %c0_10, %c0_11], %12 {strides = array<i32>} : memref<1x10x10x4xf32, #tpu.memory_space<vmem>>, vector<1x1x10x4xf32>,
    %c0_12 = arith.constant 0 : index
    %c0_13 = arith.constant 0 : index
    %c0_14 = arith.constant 0 : index
    %c0_15 = arith.constant 0 : index
    %16 = vector.load %arg5[%c0_12, %c0_13, %c0_14, %c0_15] : memref<1x10x10x4xf32, #tpu.memory_space<vmem>>, vector<1x10x1x4xf32>
    tpu.vector_store %arg5[%c0_12, %c0_13, %c0_14, %c0_15], %13 {strides = array<i32>} : memref<1x10x10x4xf32, #tpu.memory_space<vmem>>, vector<1x10x1x4xf32>,
    %c0_16 = arith.constant 0 : index
    %c0_17 = arith.constant 0 : index
    %c9_18 = arith.constant 9 : index
    %c0_19 = arith.constant 0 : index
    %17 = vector.load %arg5[%c0_16, %c0_17, %c9_18, %c0_19] : memref<1x10x10x4xf32, #tpu.memory_space<vmem>>, vector<1x10x1x4xf32>
    tpu.vector_store %arg5[%c0_16, %c0_17, %c9_18, %c0_19], %13 {strides = array<i32>} : memref<1x10x10x4xf32, #tpu.memory_space<vmem>>, vector<1x10x1x4xf32>,
    %c0_20 = arith.constant 0 : index
    %c1 = arith.constant 1 : index
    %c1_21 = arith.constant 1 : index
    %c0_22 = arith.constant 0 : index
    %18 = vector.load %arg5[%c0_20, %c1, %c1_21, %c0_22] : memref<1x10x10x4xf32, #tpu.memory_space<vmem>>, vector<1x8x8x4xf32>
    tpu.vector_store %arg5[%c0_20, %c1, %c1_21, %c0_22], %11 {strides = array<i32>} : memref<1x10x10x4xf32, #tpu.memory_space<vmem>>, vector<1x8x8x4xf32>,
    %c0_23 = arith.constant 0 : index
    %c0_24 = arith.constant 0 : index
    %c0_25 = arith.constant 0 : index
    %c0_26 = arith.constant 0 : index
    %19 = vector.load %arg5[%c0_23, %c0_24, %c0_25, %c0_26] : memref<1x10x10x4xf32, #tpu.memory_space<vmem>>, vector<1x8x8x4xf32>
    %20 = vector.shape_cast %19 : vector<1x8x8x4xf32> to vector<64x4xf32>
    %c0_27 = arith.constant 0 : index
    %c0_28 = arith.constant 0 : index
    %c1_29 = arith.constant 1 : index
    %c0_30 = arith.constant 0 : index
    %21 = vector.load %arg5[%c0_27, %c0_28, %c1_29, %c0_30] : memref<1x10x10x4xf32, #tpu.memory_space<vmem>>, vector<1x8x8x4xf32>
    %22 = vector.shape_cast %21 : vector<1x8x8x4xf32> to vector<64x4xf32>
    %c0_31 = arith.constant 0 : index
    %c0_32 = arith.constant 0 : index
    %c2 = arith.constant 2 : index
    %c0_33 = arith.constant 0 : index
    %23 = vector.load %arg5[%c0_31, %c0_32, %c2, %c0_33] : memref<1x10x10x4xf32, #tpu.memory_space<vmem>>, vector<1x8x8x4xf32>
    %24 = vector.shape_cast %23 : vector<1x8x8x4xf32> to vector<64x4xf32>
    %c0_34 = arith.constant 0 : index
    %c1_35 = arith.constant 1 : index
    %c0_36 = arith.constant 0 : index
    %c0_37 = arith.constant 0 : index
    %25 = vector.load %arg5[%c0_34, %c1_35, %c0_36, %c0_37] : memref<1x10x10x4xf32, #tpu.memory_space<vmem>>, vector<1x8x8x4xf32>
    %26 = vector.shape_cast %25 : vector<1x8x8x4xf32> to vector<64x4xf32>
    %c0_38 = arith.constant 0 : index
    %c1_39 = arith.constant 1 : index
    %c1_40 = arith.constant 1 : index
    %c0_41 = arith.constant 0 : index
    %27 = vector.load %arg5[%c0_38, %c1_39, %c1_40, %c0_41] : memref<1x10x10x4xf32, #tpu.memory_space<vmem>>, vector<1x8x8x4xf32>
    %28 = vector.shape_cast %27 : vector<1x8x8x4xf32> to vector<64x4xf32>
    %c0_42 = arith.constant 0 : index
    %c1_43 = arith.constant 1 : index
    %c2_44 = arith.constant 2 : index
    %c0_45 = arith.constant 0 : index
    %29 = vector.load %arg5[%c0_42, %c1_43, %c2_44, %c0_45] : memref<1x10x10x4xf32, #tpu.memory_space<vmem>>, vector<1x8x8x4xf32>
    %30 = vector.shape_cast %29 : vector<1x8x8x4xf32> to vector<64x4xf32>
    %c0_46 = arith.constant 0 : index
    %c2_47 = arith.constant 2 : index
    %c0_48 = arith.constant 0 : index
    %c0_49 = arith.constant 0 : index
    %31 = vector.load %arg5[%c0_46, %c2_47, %c0_48, %c0_49] : memref<1x10x10x4xf32, #tpu.memory_space<vmem>>, vector<1x8x8x4xf32>
    %32 = vector.shape_cast %31 : vector<1x8x8x4xf32> to vector<64x4xf32>
    %c0_50 = arith.constant 0 : index
    %c2_51 = arith.constant 2 : index
    %c1_52 = arith.constant 1 : index
    %c0_53 = arith.constant 0 : index
    %33 = vector.load %arg5[%c0_50, %c2_51, %c1_52, %c0_53] : memref<1x10x10x4xf32, #tpu.memory_space<vmem>>, vector<1x8x8x4xf32>
    %34 = vector.shape_cast %33 : vector<1x8x8x4xf32> to vector<64x4xf32>
    %c0_54 = arith.constant 0 : index
    %c2_55 = arith.constant 2 : index
    %c2_56 = arith.constant 2 : index
    %c0_57 = arith.constant 0 : index
    %35 = vector.load %arg5[%c0_54, %c2_55, %c2_56, %c0_57] : memref<1x10x10x4xf32, #tpu.memory_space<vmem>>, vector<1x8x8x4xf32>
    %36 = vector.shape_cast %35 : vector<1x8x8x4xf32> to vector<64x4xf32>
    %37 = tpu.concatenate %20, %22, %24, %26, %28, %30, %32, %34, %36 in 1 : vector<64x4xf32>, vector<64x4xf32>, vector<64x4xf32>, vector<64x4xf32>, vector<64x4xf32>, vector<64x4xf32>, vector<64x4xf32>, vector<64x4xf32>, vector<64x4xf32> -> vector<64x36xf32>
    %c0_58 = arith.constant 0 : index
    %c0_59 = arith.constant 0 : index
    %38 = vector.load %arg2[%c0_58, %c0_59] : memref<36x8xf32, #tpu.memory_space<vmem>>, vector<36x8xf32>
    %cst_60 = arith.constant dense<0.000000e+00> : vector<64x8xf32>
    %39 = tpu.matmul %37, %38, %cst_60 {dimension_numbers = #tpu.dot_dimension_numbers<[1], [0], [0], [1], [0, 0, 1, 1], [], []>} : vector<64x36xf32>, vector<36x8xf32>, vector<64x8xf32> -> vector<64x8xf32>
    %40 = vector.shape_cast %39 : vector<64x8xf32> to vector<1x64x8xf32>
    %cst_61 = arith.constant dense<0.000000e+00> : vector<1x8xf32>
    %41 = vector.multi_reduction <add>, %40, %cst_61 [1] : vector<1x64x8xf32> to vector<1x8xf32>
    %42 = vector.shape_cast %41 : vector<1x8xf32> to vector<1x1x8xf32>
    %43 = arith.mulf %40, %40 : vector<1x64x8xf32>
    %cst_62 = arith.constant dense<0.000000e+00> : vector<1x8xf32>
    %44 = vector.multi_reduction <add>, %43, %cst_62 [1] : vector<1x64x8xf32> to vector<1x8xf32>
    %45 = vector.shape_cast %44 : vector<1x8xf32> to vector<1x1x8xf32>
    %cst_63 = arith.constant 1.562500e-02 : f32
    %46 = vector.broadcast %cst_63 : f32 to vector<1x1x8xf32>
    %47 = arith.mulf %42, %46 : vector<1x1x8xf32>
    %cst_64 = arith.constant 1.562500e-02 : f32
    %48 = vector.broadcast %cst_64 : f32 to vector<1x1x8xf32>
    %49 = arith.mulf %45, %48 : vector<1x1x8xf32>
    %50 = arith.mulf %47, %47 : vector<1x1x8xf32>
    %51 = arith.subf %49, %50 : vector<1x1x8xf32>
    %52 = vector.broadcast %47 : vector<1x1x8xf32> to vector<1x64x8xf32>
    %53 = arith.subf %40, %52 : vector<1x64x8xf32>
    %cst_65 = arith.constant 9.99999974E-6 : f32
    %54 = vector.broadcast %cst_65 : f32 to vector<1x1x8xf32>
    %55 = arith.addf %51, %54 : vector<1x1x8xf32>
    %56 = math.rsqrt %55 : vector<1x1x8xf32>
    %57 = vector.broadcast %56 : vector<1x1x8xf32> to vector<1x64x8xf32>
    %58 = arith.mulf %53, %57 : vector<1x64x8xf32>
    %cst_66 = arith.constant 0.000000e+00 : f32
    %59 = vector.broadcast %cst_66 : f32 to vector<1x64x8xf32>
    %60 = arith.maximumf %58, %59 : vector<1x64x8xf32>
    %cst_67 = arith.constant 0.000000e+00 : f32
    %61 = vector.broadcast %cst_67 : f32 to vector<1x1x10x8xf32>
    %cst_68 = arith.constant 0.000000e+00 : f32
    %62 = vector.broadcast %cst_68 : f32 to vector<1x10x1x8xf32>
    %c0_69 = arith.constant 0 : index
    %c0_70 = arith.constant 0 : index
    %c0_71 = arith.constant 0 : index
    %c0_72 = arith.constant 0 : index
    %63 = vector.load %arg6[%c0_69, %c0_70, %c0_71, %c0_72] : memref<1x10x10x8xf32, #tpu.memory_space<vmem>>, vector<1x1x10x8xf32>
    tpu.vector_store %arg6[%c0_69, %c0_70, %c0_71, %c0_72], %61 {strides = array<i32>} : memref<1x10x10x8xf32, #tpu.memory_space<vmem>>, vector<1x1x10x8xf32>,
    %c0_73 = arith.constant 0 : index
    %c9_74 = arith.constant 9 : index
    %c0_75 = arith.constant 0 : index
    %c0_76 = arith.constant 0 : index
    %64 = vector.load %arg6[%c0_73, %c9_74, %c0_75, %c0_76] : memref<1x10x10x8xf32, #tpu.memory_space<vmem>>, vector<1x1x10x8xf32>
    tpu.vector_store %arg6[%c0_73, %c9_74, %c0_75, %c0_76], %61 {strides = array<i32>} : memref<1x10x10x8xf32, #tpu.memory_space<vmem>>, vector<1x1x10x8xf32>,
    %c0_77 = arith.constant 0 : index
    %c0_78 = arith.constant 0 : index
    %c0_79 = arith.constant 0 : index
    %c0_80 = arith.constant 0 : index
    %65 = vector.load %arg6[%c0_77, %c0_78, %c0_79, %c0_80] : memref<1x10x10x8xf32, #tpu.memory_space<vmem>>, vector<1x10x1x8xf32>
    tpu.vector_store %arg6[%c0_77, %c0_78, %c0_79, %c0_80], %62 {strides = array<i32>} : memref<1x10x10x8xf32, #tpu.memory_space<vmem>>, vector<1x10x1x8xf32>,
    %c0_81 = arith.constant 0 : index
    %c0_82 = arith.constant 0 : index
    %c9_83 = arith.constant 9 : index
    %c0_84 = arith.constant 0 : index
    %66 = vector.load %arg6[%c0_81, %c0_82, %c9_83, %c0_84] : memref<1x10x10x8xf32, #tpu.memory_space<vmem>>, vector<1x10x1x8xf32>
    tpu.vector_store %arg6[%c0_81, %c0_82, %c9_83, %c0_84], %62 {strides = array<i32>} : memref<1x10x10x8xf32, #tpu.memory_space<vmem>>, vector<1x10x1x8xf32>,
    %67 = vector.shape_cast %60 : vector<1x64x8xf32> to vector<1x8x8x8xf32>
    %c0_85 = arith.constant 0 : index
    %c1_86 = arith.constant 1 : index
    %c1_87 = arith.constant 1 : index
    %c0_88 = arith.constant 0 : index
    %68 = vector.load %arg6[%c0_85, %c1_86, %c1_87, %c0_88] : memref<1x10x10x8xf32, #tpu.memory_space<vmem>>, vector<1x8x8x8xf32>
    tpu.vector_store %arg6[%c0_85, %c1_86, %c1_87, %c0_88], %67 {strides = array<i32>} : memref<1x10x10x8xf32, #tpu.memory_space<vmem>>, vector<1x8x8x8xf32>,
    %c0_89 = arith.constant 0 : index
    %c0_90 = arith.constant 0 : index
    %c0_91 = arith.constant 0 : index
    %c0_92 = arith.constant 0 : index
    %69 = vector.load %arg6[%c0_89, %c0_90, %c0_91, %c0_92] : memref<1x10x10x8xf32, #tpu.memory_space<vmem>>, vector<1x8x8x8xf32>
    %70 = vector.shape_cast %69 : vector<1x8x8x8xf32> to vector<64x8xf32>
    %c0_93 = arith.constant 0 : index
    %c0_94 = arith.constant 0 : index
    %c1_95 = arith.constant 1 : index
    %c0_96 = arith.constant 0 : index
    %71 = vector.load %arg6[%c0_93, %c0_94, %c1_95, %c0_96] : memref<1x10x10x8xf32, #tpu.memory_space<vmem>>, vector<1x8x8x8xf32>
    %72 = vector.shape_cast %71 : vector<1x8x8x8xf32> to vector<64x8xf32>
    %c0_97 = arith.constant 0 : index
    %c0_98 = arith.constant 0 : index
    %c2_99 = arith.constant 2 : index
    %c0_100 = arith.constant 0 : index
    %73 = vector.load %arg6[%c0_97, %c0_98, %c2_99, %c0_100] : memref<1x10x10x8xf32, #tpu.memory_space<vmem>>, vector<1x8x8x8xf32>
    %74 = vector.shape_cast %73 : vector<1x8x8x8xf32> to vector<64x8xf32>
    %c0_101 = arith.constant 0 : index
    %c1_102 = arith.constant 1 : index
    %c0_103 = arith.constant 0 : index
    %c0_104 = arith.constant 0 : index
    %75 = vector.load %arg6[%c0_101, %c1_102, %c0_103, %c0_104] : memref<1x10x10x8xf32, #tpu.memory_space<vmem>>, vector<1x8x8x8xf32>
    %76 = vector.shape_cast %75 : vector<1x8x8x8xf32> to vector<64x8xf32>
    %c0_105 = arith.constant 0 : index
    %c1_106 = arith.constant 1 : index
    %c1_107 = arith.constant 1 : index
    %c0_108 = arith.constant 0 : index
    %77 = vector.load %arg6[%c0_105, %c1_106, %c1_107, %c0_108] : memref<1x10x10x8xf32, #tpu.memory_space<vmem>>, vector<1x8x8x8xf32>
    %78 = vector.shape_cast %77 : vector<1x8x8x8xf32> to vector<64x8xf32>
    %c0_109 = arith.constant 0 : index
    %c1_110 = arith.constant 1 : index
    %c2_111 = arith.constant 2 : index
    %c0_112 = arith.constant 0 : index
    %79 = vector.load %arg6[%c0_109, %c1_110, %c2_111, %c0_112] : memref<1x10x10x8xf32, #tpu.memory_space<vmem>>, vector<1x8x8x8xf32>
    %80 = vector.shape_cast %79 : vector<1x8x8x8xf32> to vector<64x8xf32>
    %c0_113 = arith.constant 0 : index
    %c2_114 = arith.constant 2 : index
    %c0_115 = arith.constant 0 : index
    %c0_116 = arith.constant 0 : index
    %81 = vector.load %arg6[%c0_113, %c2_114, %c0_115, %c0_116] : memref<1x10x10x8xf32, #tpu.memory_space<vmem>>, vector<1x8x8x8xf32>
    %82 = vector.shape_cast %81 : vector<1x8x8x8xf32> to vector<64x8xf32>
    %c0_117 = arith.constant 0 : index
    %c2_118 = arith.constant 2 : index
    %c1_119 = arith.constant 1 : index
    %c0_120 = arith.constant 0 : index
    %83 = vector.load %arg6[%c0_117, %c2_118, %c1_119, %c0_120] : memref<1x10x10x8xf32, #tpu.memory_space<vmem>>, vector<1x8x8x8xf32>
    %84 = vector.shape_cast %83 : vector<1x8x8x8xf32> to vector<64x8xf32>
    %c0_121 = arith.constant 0 : index
    %c2_122 = arith.constant 2 : index
    %c2_123 = arith.constant 2 : index
    %c0_124 = arith.constant 0 : index
    %85 = vector.load %arg6[%c0_121, %c2_122, %c2_123, %c0_124] : memref<1x10x10x8xf32, #tpu.memory_space<vmem>>, vector<1x8x8x8xf32>
    %86 = vector.shape_cast %85 : vector<1x8x8x8xf32> to vector<64x8xf32>
    %87 = tpu.concatenate %70, %72, %74, %76, %78, %80, %82, %84, %86 in 1 : vector<64x8xf32>, vector<64x8xf32>, vector<64x8xf32>, vector<64x8xf32>, vector<64x8xf32>, vector<64x8xf32>, vector<64x8xf32>, vector<64x8xf32>, vector<64x8xf32> -> vector<64x72xf32>
    %c0_125 = arith.constant 0 : index
    %c0_126 = arith.constant 0 : index
    %88 = vector.load %arg3[%c0_125, %c0_126] : memref<72x8xf32, #tpu.memory_space<vmem>>, vector<72x8xf32>
    %cst_127 = arith.constant dense<0.000000e+00> : vector<64x8xf32>
    %89 = tpu.matmul %87, %88, %cst_127 {dimension_numbers = #tpu.dot_dimension_numbers<[1], [0], [0], [1], [0, 0, 1, 1], [], []>} : vector<64x72xf32>, vector<72x8xf32>, vector<64x8xf32> -> vector<64x8xf32>
    %90 = vector.shape_cast %89 : vector<64x8xf32> to vector<1x64x8xf32>
    %91 = tpu.transpose %90, [0, 2, 1] : vector<1x64x8xf32> -> vector<1x8x64xf32>
    %cst_128 = arith.constant dense<0.000000e+00> : vector<1x8xf32>
    %92 = vector.multi_reduction <add>, %91, %cst_128 [2] : vector<1x8x64xf32> to vector<1x8xf32>
    %93 = vector.shape_cast %92 : vector<1x8xf32> to vector<1x8x1xf32>
    %94 = arith.mulf %91, %91 : vector<1x8x64xf32>
    %cst_129 = arith.constant dense<0.000000e+00> : vector<1x8xf32>
    %95 = vector.multi_reduction <add>, %94, %cst_129 [2] : vector<1x8x64xf32> to vector<1x8xf32>
    %96 = vector.shape_cast %95 : vector<1x8xf32> to vector<1x8x1xf32>
    %cst_130 = arith.constant 1.562500e-02 : f32
    %97 = vector.broadcast %cst_130 : f32 to vector<1x8x1xf32>
    %98 = arith.mulf %93, %97 : vector<1x8x1xf32>
    %cst_131 = arith.constant 1.562500e-02 : f32
    %99 = vector.broadcast %cst_131 : f32 to vector<1x8x1xf32>
    %100 = arith.mulf %96, %99 : vector<1x8x1xf32>
    %101 = arith.mulf %98, %98 : vector<1x8x1xf32>
    %102 = arith.subf %100, %101 : vector<1x8x1xf32>
    %103 = vector.broadcast %98 : vector<1x8x1xf32> to vector<1x8x64xf32>
    %104 = arith.subf %91, %103 : vector<1x8x64xf32>
    %cst_132 = arith.constant 9.99999974E-6 : f32
    %105 = vector.broadcast %cst_132 : f32 to vector<1x8x1xf32>
    %106 = arith.addf %102, %105 : vector<1x8x1xf32>
    %107 = math.rsqrt %106 : vector<1x8x1xf32>
    %108 = vector.broadcast %107 : vector<1x8x1xf32> to vector<1x8x64xf32>
    %109 = arith.mulf %104, %108 : vector<1x8x64xf32>
    %cst_133 = arith.constant 0.000000e+00 : f32
    %110 = vector.broadcast %cst_133 : f32 to vector<1x8x64xf32>
    %111 = arith.maximumf %109, %110 : vector<1x8x64xf32>
    %c0_134 = arith.constant 0 : index
    %c0_135 = arith.constant 0 : index
    %c0_136 = arith.constant 0 : index
    %112 = vector.load %arg4[%c0_134, %c0_135, %c0_136] : memref<1x8x64xf32, #tpu.memory_space<vmem>>, vector<1x8x64xf32>
    tpu.vector_store %arg4[%c0_134, %c0_135, %c0_136], %111 {strides = array<i32>} : memref<1x8x64xf32, #tpu.memory_space<vmem>>, vector<1x8x64xf32>,
    return
  }
  func.func @transform_0(%arg0: i32) -> (i32, i32, i32, i32, i32) {
    %c0_i32 = arith.constant 0 : i32
    %c0_i32_0 = arith.constant 0 : i32
    %c0_i32_1 = arith.constant 0 : i32
    %c0_i32_2 = arith.constant 0 : i32
    %c0_i32_3 = arith.constant 0 : i32
    return %arg0, %c0_i32, %c0_i32_0, %c0_i32_1, %c0_i32_2 : i32, i32, i32, i32, i32
  }
  func.func @transform_1(%arg0: i32) -> (i32, i32) {
    %c0_i32 = arith.constant 0 : i32
    %c0_i32_0 = arith.constant 0 : i32
    %c0_i32_1 = arith.constant 0 : i32
    return %c0_i32, %c0_i32_0 : i32, i32
  }
  func.func @transform_2(%arg0: i32) -> (i32, i32) {
    %c0_i32 = arith.constant 0 : i32
    %c0_i32_0 = arith.constant 0 : i32
    %c0_i32_1 = arith.constant 0 : i32
    return %c0_i32, %c0_i32_0 : i32, i32
  }
  func.func @transform_3(%arg0: i32) -> (i32, i32, i32) {
    %c0_i32 = arith.constant 0 : i32
    %c0_i32_0 = arith.constant 0 : i32
    %c0_i32_1 = arith.constant 0 : i32
    return %arg0, %c0_i32, %c0_i32_0 : i32, i32, i32
  }
}

</mosaic_0001>

<bundles_post_ra>
// kernel: tpu_custom_call.1
= control target key start
LH: loop header
LB: loop body
LE: loop exit
PB: predicated region body
PF: predicated region fallthrough
CT: control target
= control target key end

     0   :  { %8 = vsyncpa [#allocation5], 0  ;;  %s2402_s0 = inlined_call_operand.vmem [shape: f32[2,4,8,8,4], index: 0, kind: input, shape index: {}]   ;;  %s2403_s1 = inlined_call_operand.vmem [shape: f32[36,8], index: 1, kind: input, shape index: {}]   ;;  %s2404_s2 = inlined_call_operand.vmem [shape: f32[72,8], index: 2, kind: input, shape index: {}]   ;;  %s2405_s3 = inlined_call_operand.hbm [shape: f32[2,8,64], index: 3, kind: output, shape index: {}]  }
   0x1   :  { %10 = vsyncpa [#allocation5 + $0x1], 0  ;;  %s1663_s12 = smov 0   ;;  %s1665_s13 = smov 0  }
   0x2   :  { %s1667_s14 = smov 0   ;;  %s1669_s15 = smov 0  }
   0x3 LB: > { %s1684_s16 = sadd.s32 4294967295, %s1628_s15   ;;  %s1467_s17 = sadd.s32 4294967294, %s1628_s15   ;;  %s1628_s15 = sphi %s1669_s15, %s2411_s15   ;;  %s1624_s14 = sphi %s1667_s14, %s2410_s14   ;;  %s1620_s13 = sphi %s1665_s13, %s2409_s13   ;;  %s1616_s12 = sphi %s1663_s12, %s2408_s12  }
   0x4   : > { %s1688_s18 = sadd.s32 1, %s1628_s15   ;;  %s91_s19 = sadd.s32 1, %s1624_s14 }
   0x5   : > { %s88_s20 = ssub.s32 %s1628_s15, %s1688_s18  ;;  %p101_p0 = scmp.ne.s32.totalorder %s1624_s14, %s1620_s13 }
   0x6   : > { %p89_p1 = scmp.eq.s32.totalorder %s88_s20, 0  ;;  %p102_p2 = scmp.eq.s32.totalorder %s1684_s16, 1 }
   0x7   : > { %p107_p3 = scmp.ne.s32.totalorder %s1620_s13, %s1616_s12  ;;  %p108_p4 = scmp.eq.s32.totalorder %s1467_s17, 1 }
   0x8   : > { %s1699_s21 = scalar_select %p89_p1, %s1624_s14, %s91_s19  }
   0x9   : > { %p1701_p5 = por %p102_p2, %p101_p0  ;;  %p1705_p6 = por %p108_p4, %p107_p3 }
   0xa   : > { %p1470_p7 = scmp.ge.s32.totalorder %s1628_s15, 1  ;;  %p140_p8 = scmp.lt.s32.totalorder %s1628_s15, 3 }
   0xc   : > { %p141_p9 = pnand %p1470_p7, %p140_p8 }
   0xd   : > { %p164_p10 = scmp.lt.s32.totalorder (!%p141_p9), %s1684_s16, 1  ;;  %s1631_s26 = smov (!%p141_p9), 4  }
   0xe   : > { %144 = sbr.rel (%p141_p9) target bundleno = 1181 (0x49d), region = 32  ;;  %s1632_s30 = smov (!%p141_p9), 8  }
   0xf   : > { %s1633_s4 = smov (!%p141_p9), 12   ;;  %s1634_s5 = smov (!%p141_p9), 20  }
  0x10   : > { %s1635_s6 = smov (!%p141_p9), 28   ;;  %s1636_s7 = smov (!%p141_p9), 16  }
  0x11   : > { %s1637_s8 = smov (!%p141_p9), 24   ;;  %s1638_s9 = smov (!%p141_p9), 32  }
  0x12   : > { %s1586_s19 = scalar_lea.hbm (!%p141_p9), %s2405_s3, 16 }
  0x13   : > { %vm225_vm0 = vcmask 31744   ;;  %vm227_vm1 = vcmask 25600   ;;  %v1630_v0 = vmov 0.0   ;;  %vm232_vm2 = vcmask 24576   ;;  %s165_s24 = scalar_select %p164_p10, %s1684_s16, 1 }
  0x14   : > { %226 = vst.msk [vmem:[#allocation2] sm:$0xff] %vm225_vm0, %v1630_v0  ;;  %vm599_vm3 = vcmask 64512   ;;  %vm692_vm4 = vcmask 1043456   ;;  %vm608_vm5 = vcmask 97280   ;;  %vm617_vm6 = vcmask 130048  }
  0x15   : > { %228 = vst.msk [vmem:[#allocation2 + $0x8] sm:$0x3] %vm227_vm1, %v1630_v0  ;;  %s1495_s25 = sshll.u32 %s165_s24, 8  ;;  %vm626_vm7 = vcmask 162816   ;;  %vm635_vm8 = vcmask 195584   ;;  %vm644_vm9 = vcmask 228352  }
  0x16   : > { %230 = vst.msk [vmem:[#allocation2 + $0x90] sm:$0xff] %vm225_vm0, %v1630_v0  ;;  %s1735_s29 = scalar_lea.vmem %s2402_s0, %s1495_s25  ;;  %vm653_vm10 = vcmask 261120   ;;  %vm667_vm11 = vcmask 293888   ;;  %vm827_vm12 = vcmask 58368   ;;  %vm832_vm13 = vcmask 57344  }
  0x17   : > { %231 = vst.msk [vmem:[#allocation2 + $0x98] sm:$0x3] %vm227_vm1, %v1630_v0  ;;  %v169_v2 = vld [vmem:[%s1735_s29] sm:$0xff]  ;;  %v170_v6 = vld [vmem:[%s1735_s29 + $0x8] sm:$0xff]  ;;  %v171_v15 = vld [vmem:[%s1735_s29 + $0x10] sm:$0xff]  ;;  %vm1223_vm1 = vcmask 326656  }
  0x18   : > { %243 = vst.msk [vmem:[#allocation2 + $0x9] sm:$0x1] %vm232_vm2, %v1630_v0  ;;  %v177_v3 = vld [vmem:[%s1735_s29 + $0x40] sm:$0xff]  ;;  %v178_v7 = vld [vmem:[%s1735_s29 + $0x48] sm:$0xff]  ;;  %v179_v16 = vld [vmem:[%s1735_s29 + $0x50] sm:$0xff] }
  0x19   : > { %233 = vst.msk [vmem:[#allocation2] sm:$0x1] %vm232_vm2, %v1630_v0  ;;  %v185_v4 = vld [vmem:[%s1735_s29 + $0x80] sm:$0xff]  ;;  %v186_v9 = vld [vmem:[%s1735_s29 + $0x88] sm:$0xff]  ;;  %v201_v11 = vmax.f32 %v169_v2, %v177_v3  ;;  %v202_v13 = vmax.f32 %v170_v6, %v178_v7  ;;  %v187_v17 = vld [vmem:[%s1735_s29 + $0x90] sm:$0xff]  ;;  %v203_v20 = vmax.f32 %v171_v15, %v179_v16 }
  0x1a   : > { %234 = vst.msk [vmem:[#allocation2 + $0x10] sm:$0x1] %vm232_vm2, %v1630_v0  ;;  %v193_v5 = vld [vmem:[%s1735_s29 + $0xc0] sm:$0xff]  ;;  %v194_v10 = vld [vmem:[%s1735_s29 + $0xc8] sm:$0xff]  ;;  %v195_v19 = vld [vmem:[%s1735_s29 + $0xd0] sm:$0xff] }
  0x1b   : > { %235 = vst.msk [vmem:[#allocation2 + $0x20] sm:$0x1] %vm232_vm2, %v1630_v0  ;;  %v209_v12 = vmax.f32 %v185_v4, %v193_v5  ;;  %v210_v14 = vmax.f32 %v186_v9, %v194_v10  ;;  %v211_v22 = vmax.f32 %v187_v17, %v195_v19  ;;  %v173_v27 = vld [vmem:[%s1735_s29 + $0x20] sm:$0xff]  ;;  %v174_v32 = vld [vmem:[%s1735_s29 + $0x28] sm:$0xff]  ;;  %v175_v44 = vld [vmem:[%s1735_s29 + $0x30] sm:$0xff] }
  0x1c   : > { %v270_v1 = vld [vmem:[#allocation2 + $0x1] sm:$0xff]  ;;  %236 = vst.msk [vmem:[#allocation2 + $0x30] sm:$0x1] %vm232_vm2, %v1630_v0  ;;  %v183_v45 = vld [vmem:[%s1735_s29 + $0x70] sm:$0xff]  ;;  %v172_v52 = vld [vmem:[%s1735_s29 + $0x18] sm:$0xff] }
  0x1d   : > { %343 = vrot.lane.b32.xlu0 %v270_v1, %s1631_s26  ;;  %237 = vst.msk [vmem:[#allocation2 + $0x40] sm:$0x1] %vm232_vm2, %v1630_v0  ;;  %v217_v18 = vmax.f32 %v201_v11, %v209_v12  ;;  %v218_v21 = vmax.f32 %v202_v13, %v210_v14  ;;  %v219_v23 = vmax.f32 %v203_v20, %v211_v22  ;;  %v181_v28 = vld [vmem:[%s1735_s29 + $0x60] sm:$0xff]  ;;  %v182_v33 = vld [vmem:[%s1735_s29 + $0x68] sm:$0xff]  ;;  %v191_v46 = vld [vmem:[%s1735_s29 + $0xb0] sm:$0xff] }
  0x1e   : > { %238 = vst.msk [vmem:[#allocation2 + $0x50] sm:$0x1] %vm232_vm2, %v1630_v0  ;;  %v189_v29 = vld [vmem:[%s1735_s29 + $0xa0] sm:$0xff]  ;;  %v205_v31 = vmax.f32 %v173_v27, %v181_v28  ;;  %v190_v36 = vld [vmem:[%s1735_s29 + $0xa8] sm:$0xff]  ;;  %v206_v38 = vmax.f32 %v174_v32, %v182_v33  ;;  %v199_v47 = vld [vmem:[%s1735_s29 + $0xf0] sm:$0xff]  ;;  %v207_v48 = vmax.f32 %v175_v44, %v183_v45 }
  0x1f   : > { %239 = vst.msk [vmem:[#allocation2 + $0x60] sm:$0x1] %vm232_vm2, %v1630_v0  ;;  %v278_v8 = vld [vmem:[#allocation2 + $0x2] sm:$0xff]  ;;  %v215_v50 = vmax.f32 %v191_v46, %v199_v47  ;;  %v180_v53 = vld [vmem:[%s1735_s29 + $0x58] sm:$0xff]  ;;  %v664_v20 = vld [vmem:[%s2403_s1 + $0x10] sm:$0xff] }
  0x20   : > { %240 = vst.msk [vmem:[#allocation2 + $0x70] sm:$0x1] %vm232_vm2, %v1630_v0  ;;  %v197_v30 = vld [vmem:[%s1735_s29 + $0xe0] sm:$0xff]  ;;  %v198_v37 = vld [vmem:[%s1735_s29 + $0xe8] sm:$0xff]  ;;  %v188_v54 = vld [vmem:[%s1735_s29 + $0x98] sm:$0xff]  ;;  %v204_v56 = vmax.f32 %v172_v52, %v180_v53 }
  0x21   : > { %241 = vst.msk [vmem:[#allocation2 + $0x80] sm:$0x1] %vm232_vm2, %v1630_v0  ;;  %v213_v35 = vmax.f32 %v189_v29, %v197_v30  ;;  %v214_v39 = vmax.f32 %v190_v36, %v198_v37  ;;  %v223_v51 = vmax.f32 %v207_v48, %v215_v50  ;;  %v196_v55 = vld [vmem:[%s1735_s29 + $0xd8] sm:$0xff]  ;;  %v666_v17 = vld [vmem:[%s2403_s1 + $0x20] sm:$0xf] }
  0x22   : > { %242 = vst.msk [vmem:[#allocation2 + $0x90] sm:$0x1] %vm232_vm2, %v1630_v0  ;;  %v212_v59 = vmax.f32 %v188_v54, %v196_v55  ;;  %v176_v6 = vld [vmem:[%s1735_s29 + $0x38] sm:$0xff]  ;;  %1474 = vmatpush.msk.msra.mxu0 %vm692_vm4, %v666_v17  ;;  %1496 = vmatpush.msk.msra.mxu3 %vm692_vm4, %v666_v17  ;;  %v262_v32 = vld [vmem:[#allocation2] sm:$0xff]  ;;  %vm1241_vm4 = vcmask 457728  }
  0x23   : > { %244 = vst.msk [vmem:[#allocation2 + $0x19] sm:$0x1] %vm232_vm2, %v1630_v0  ;;  %v221_v41 = vmax.f32 %v205_v31, %v213_v35  ;;  %v222_v42 = vmax.f32 %v206_v38, %v214_v39  ;;  %v184_v7 = vld [vmem:[%s1735_s29 + $0x78] sm:$0xff] }
  0x24   : > { %245 = vst.msk [vmem:[#allocation2 + $0x29] sm:$0x1] %vm232_vm2, %v1630_v0  ;;  %v220_v60 = vmax.f32 %v204_v56, %v212_v59  ;;  %v200_v9 = vld [vmem:[%s1735_s29 + $0xf8] sm:$0xff]  ;;  %v208_v10 = vmax.f32 %v176_v6, %v184_v7 }
  0x25   : > { %375 = vrot.lane.b32.xlu0 %v278_v8, %s1632_s30  ;;  %246 = vst.msk [vmem:[#allocation2 + $0x39] sm:$0x1] %vm232_vm2, %v1630_v0  ;;  %v192_v8 = vld [vmem:[%s1735_s29 + $0xb8] sm:$0xff] }
  0x26   : > { %247 = vst.msk [vmem:[#allocation2 + $0x49] sm:$0x1] %vm232_vm2, %v1630_v0  ;;  %v216_v13 = vmax.f32 %v192_v8, %v200_v9 }
  0x27   : > { %248 = vst.msk [vmem:[#allocation2 + $0x59] sm:$0x1] %vm232_vm2, %v1630_v0 }
  0x28   : > { %249 = vst.msk [vmem:[#allocation2 + $0x69] sm:$0x1] %vm232_vm2, %v1630_v0  ;;  %v224_v14 = vmax.f32 %v208_v10, %v216_v13  ;;  %v326_v10 = vld [vmem:[#allocation2 + $0x91] sm:$0xff] }
  0x29   : > { %250 = vst.msk [vmem:[#allocation2 + $0x79] sm:$0x1] %vm232_vm2, %v1630_v0  ;;  %v318_v7 = vld [vmem:[#allocation2 + $0x90] sm:$0xff] }
  0x2a   : > { %251 = vst.msk [vmem:[#allocation2 + $0x89] sm:$0x1] %vm232_vm2, %v1630_v0 }
  0x2b   : > { %252 = vst.msk [vmem:[#allocation2 + $0x99] sm:$0x1] %vm232_vm2, %v1630_v0  ;;  %vm1232_vm2 = vcmask 392192  }
  0x2c   : > { %254 = vst.msk [vmem:[#allocation2 + $0x11] sm:$0xff] %vm225_vm0, %v217_v18  ;;  %v665_v18 = vld [vmem:[%s2403_s1 + $0x18] sm:$0xff] }
  0x2d   : > { %255 = vst.msk [vmem:[#allocation2 + $0x21] sm:$0xff] %vm225_vm0, %v218_v21  ;;  %708 = vmatpush.msra.mxu0 %v665_v18  ;;  %1497 = vmatpush.msra.mxu3 %v665_v18  ;;  %v663_v21 = vld [vmem:[%s2403_s1 + $0x8] sm:$0xff] }
  0x2e   : > { %256 = vst.msk [vmem:[#allocation2 + $0x31] sm:$0xff] %vm225_vm0, %v219_v23 }
  0x2f   : > { %258 = vst.msk [vmem:[#allocation2 + $0x51] sm:$0xff] %vm225_vm0, %v221_v41  ;;  %709 = vmatpush.msra.mxu0 %v664_v20  ;;  %1498 = vmatpush.msra.mxu3 %v664_v20 }
  0x30   : > { %259 = vst.msk [vmem:[#allocation2 + $0x61] sm:$0xff] %vm225_vm0, %v222_v42 }
  0x31   : > { %260 = vst.msk [vmem:[#allocation2 + $0x71] sm:$0xff] %vm225_vm0, %v223_v51  ;;  %710 = vmatpush.msra.mxu0 %v663_v21  ;;  %1499 = vmatpush.msra.mxu3 %v663_v21 }
  0x32   : > { %257 = vst.msk [vmem:[#allocation2 + $0x41] sm:$0xff] %vm225_vm0, %v220_v60  ;;  %v334_v8 = vld [vmem:[#allocation2 + $0x92] sm:$0xff] }
  0x33   : > { %v1781_v24 = vld [vmem:[#allocation2 + $0x10] sm:$0xff]  ;;  %826 = vst.msk [vmem:[#allocation3] sm:$0xff] %vm599_vm3, %v1630_v0 }
  0x34   : > { %v279_v25 = vld [vmem:[#allocation2 + $0x12] sm:$0xff]  ;;  %407 = vrot.lane.b32.xlu1 %v1781_v24, %s1633_s4  ;;  %v319_v26 = vld [vmem:[#allocation2 + $0x21] sm:$0xff]  ;;  %830 = vst.msk [vmem:[#allocation3 + $0x90] sm:$0xff] %vm599_vm3, %v1630_v0 }
  0x35   : > { %471 = vrot.lane.b32.xlu2 %v279_v25, %s1634_s5  ;;  %535 = vrot.lane.b32.xlu0 %v319_v26, %s1635_s6  ;;  %v294_v34 = vld [vmem:[#allocation2 + $0x11] sm:$0xff]  ;;  %v1795_v40 = vld [vmem:[#allocation2 + $0x20] sm:$0xff]  ;;  %261 = vst.msk [vmem:[#allocation2 + $0x81] sm:$0xff] %vm225_vm0, %v224_v14 }
  0x36   : > { %v327_v43 = vld [vmem:[#allocation2 + $0x22] sm:$0xff]  ;;  %v328_v49 = vld [vmem:[#allocation2 + $0x32] sm:$0xff]  ;;  %828 = vst.msk [vmem:[#allocation3 + $0x8] sm:$0x3] %vm827_vm12, %v1630_v0 }
  0x37   : > { %v1819_v57 = vld [vmem:[#allocation2 + $0x30] sm:$0xff]  ;;  %v1828_v62 = vld [vmem:[#allocation2 + $0x60] sm:$0xff]  ;;  %831 = vst.msk [vmem:[#allocation3 + $0x98] sm:$0x3] %vm827_vm12, %v1630_v0 }
  0x38   : > { %v320_v58 = vld [vmem:[#allocation2 + $0x31] sm:$0xff]  ;;  %v1842_v1 = vld [vmem:[#allocation2 + $0x61] sm:$0xff]  ;;  %843 = vst.msk [vmem:[#allocation3 + $0x9] sm:$0x1] %vm832_vm13, %v1630_v0 }
  0x39   : > { %v1826_v61 = vld [vmem:[#allocation2 + $0x51] sm:$0xff]  ;;  %v1851_v3 = vld [vmem:[#allocation2 + $0x62] sm:$0xff]  ;;  %833 = vst.msk [vmem:[#allocation3] sm:$0x1] %vm832_vm13, %v1630_v0 }
  0x3a   : > { %v1835_v63 = vld [vmem:[#allocation2 + $0x52] sm:$0xff]  ;;  %v1853_v4 = vld [vmem:[#allocation2 + $0x40] sm:$0xff]  ;;  %834 = vst.msk [vmem:[#allocation3 + $0x10] sm:$0x1] %vm832_vm13, %v1630_v0 }
  0x3b   : > { %v1844_v2 = vld [vmem:[#allocation2 + $0x70] sm:$0xff]  ;;  %v1855_v5 = vld [vmem:[#allocation2 + $0x42] sm:$0xff]  ;;  %835 = vst.msk [vmem:[#allocation3 + $0x20] sm:$0x1] %vm832_vm13, %v1630_v0 }
  0x3c   : > { %439 = vrot.lane.b32.xlu1 %v294_v34, %s1636_s7  ;;  %v321_v11 = vld [vmem:[#allocation2 + $0x41] sm:$0xff]  ;;  %v1867_v12 = vld [vmem:[#allocation2 + $0x71] sm:$0xff]  ;;  %836 = vst.msk [vmem:[#allocation3 + $0x30] sm:$0x1] %vm832_vm13, %v1630_v0 }
  0x3d   : > { %503 = vrot.lane.b32.xlu2 %v1795_v40, %s1637_s8  ;;  %377 = vrot.lane.b32.xlu0 %v279_v25, %s1632_s30  ;;  %v332_v15 = vld [vmem:[#allocation2 + $0x72] sm:$0xff]  ;;  %v662_v25 = vld [vmem:[%s2403_s1] sm:$0xff]  ;;  %837 = vst.msk [vmem:[#allocation3 + $0x40] sm:$0x1] %vm832_vm13, %v1630_v0 }
  0x3e   : > { %v1894_v19 = vld [vmem:[#allocation2 + $0x50] sm:$0xff]  ;;  %711 = vmatpush.msra.mxu0 %v662_v25  ;;  %1500 = vmatpush.msra.mxu3 %v662_v25  ;;  %v317_v29 = vld [vmem:[#allocation2 + $0x80] sm:$0xff]  ;;  %838 = vst.msk [vmem:[#allocation3 + $0x50] sm:$0x1] %vm832_vm13, %v1630_v0 }
  0x3f   : > { %839 = vst.msk [vmem:[#allocation3 + $0x60] sm:$0x1] %vm832_vm13, %v1630_v0 }
  0x40   : > { %840 = vst.msk [vmem:[#allocation3 + $0x70] sm:$0x1] %vm832_vm13, %v1630_v0 }
  0x41   : > { %841 = vst.msk [vmem:[#allocation3 + $0x80] sm:$0x1] %vm832_vm13, %v1630_v0 }
  0x42   : > { %842 = vst.msk [vmem:[#allocation3 + $0x90] sm:$0x1] %vm832_vm13, %v1630_v0 }
  0x43   : > { %844 = vst.msk [vmem:[#allocation3 + $0x19] sm:$0x1] %vm832_vm13, %v1630_v0 }
  0x44   : > { %567 = vrot.lane.b32.xlu1 %v327_v43, %s1638_s9  ;;  %845 = vst.msk [vmem:[#allocation3 + $0x29] sm:$0x1] %vm832_vm13, %v1630_v0 }
  0x45   : > { %345 = vrot.lane.b32.xlu2 %v294_v34, %s1631_s26  ;;  %473 = vrot.lane.b32.xlu0 %v327_v43, %s1634_s5  ;;  %v333_v34 = vld [vmem:[#allocation2 + $0x82] sm:$0xff]  ;;  %846 = vst.msk [vmem:[#allocation3 + $0x39] sm:$0x1] %vm832_vm13, %v1630_v0 }
  0x46   : > { %847 = vst.msk [vmem:[#allocation3 + $0x49] sm:$0x1] %vm832_vm13, %v1630_v0 }
  0x47   : > { %848 = vst.msk [vmem:[#allocation3 + $0x59] sm:$0x1] %vm832_vm13, %v1630_v0 }
  0x48   : > { %849 = vst.msk [vmem:[#allocation3 + $0x69] sm:$0x1] %vm832_vm13, %v1630_v0 }
  0x49   : > { %850 = vst.msk [vmem:[#allocation3 + $0x79] sm:$0x1] %vm832_vm13, %v1630_v0 }
  0x4a   : > { %851 = vst.msk [vmem:[#allocation3 + $0x89] sm:$0x1] %vm832_vm13, %v1630_v0 }
  0x4b   : > { %852 = vst.msk [vmem:[#allocation3 + $0x99] sm:$0x1] %vm832_vm13, %v1630_v0 }
  0x4c   : > { %409 = vrot.lane.b32.xlu1 %v1795_v40, %s1633_s4 }
  0x4d   : > { %441 = vrot.lane.b32.xlu2 %v319_v26, %s1636_s7  ;;  %569 = vrot.lane.b32.xlu0 %v328_v49, %s1638_s9 }
  0x54   : > { %505 = vrot.lane.b32.xlu1 %v1819_v57, %s1637_s8 }
  0x55   : > { %537 = vrot.lane.b32.xlu2 %v320_v58, %s1635_s6  ;;  %379 = vrot.lane.b32.xlu0 %v327_v43, %s1632_s30 }
  0x5c   : > { %347 = vrot.lane.b32.xlu1 %v319_v26, %s1631_s26  ;;  %v325_v26 = vld [vmem:[#allocation2 + $0x81] sm:$0xff] }
  0x5d   : > { %353 = vrot.lane.b32.xlu2 %v1826_v61, %s1631_s26  ;;  %417 = vrot.lane.b32.xlu0 %v1828_v62, %s1633_s4 }
  0x64   : > { %385 = vrot.lane.b32.xlu1 %v1835_v63, %s1632_s30 }
  0x65   : > { %411 = vrot.lane.b32.xlu2 %v1819_v57, %s1633_s4  ;;  %475 = vrot.lane.b32.xlu0 %v328_v49, %s1634_s5 }
  0x6c   : > { %443 = vrot.lane.b32.xlu1 %v320_v58, %s1636_s7 }
  0x6d   : > { %449 = vrot.lane.b32.xlu2 %v1842_v1, %s1636_s7  ;;  %513 = vrot.lane.b32.xlu0 %v1844_v2, %s1637_s8 }
  0x74   : > { %481 = vrot.lane.b32.xlu1 %v1851_v3, %s1634_s5 }
  0x75   : > { %507 = vrot.lane.b32.xlu2 %v1853_v4, %s1637_s8  ;;  %571 = vrot.lane.b32.xlu0 %v1855_v5, %s1638_s9 }
  0x7c   : > { %539 = vrot.lane.b32.xlu1 %v321_v11, %s1635_s6 }
  0x7d   : > { %545 = vrot.lane.b32.xlu2 %v1867_v12, %s1635_s6  ;;  %355 = vrot.lane.b32.xlu0 %v1842_v1, %s1631_s26 }
  0x84   : > { %577 = vrot.lane.b32.xlu1 %v332_v15, %s1638_s9 }
  0x85   : > { %349 = vrot.lane.b32.xlu2 %v320_v58, %s1631_s26  ;;  %413 = vrot.lane.b32.xlu0 %v1853_v4, %s1633_s4 }
  0x8c   : > { %381 = vrot.lane.b32.xlu1 %v328_v49, %s1632_s30 }
  0x8d   : > { %387 = vrot.lane.b32.xlu2 %v1851_v3, %s1632_s30  ;;  %451 = vrot.lane.b32.xlu0 %v1867_v12, %s1636_s7 }
  0x8f   : > { %v472_v16 = vpop.permute.xlu2 %471  ;;  %v344_v22 = vpop.permute.xlu0 %343 }
  0x90   : > { %v591_v35 = vsel %vm225_vm0, %v262_v32, %v344_v22 }
  0x94   : > { %419 = vrot.lane.b32.xlu1 %v1844_v2, %s1633_s4 }
  0x95   : > { %445 = vrot.lane.b32.xlu2 %v321_v11, %s1636_s7  ;;  %509 = vrot.lane.b32.xlu0 %v1894_v19, %s1637_s8 }
  0x97   : > { %v504_v23 = vpop.permute.xlu2 %503  ;;  %v376_v28 = vpop.permute.xlu0 %375 }
  0x98   : > { %v600_v36 = vsel %vm599_vm3, %v591_v35, %v376_v28 }
  0x9c   : > { %477 = vrot.lane.b32.xlu1 %v1855_v5, %s1634_s5 }
  0x9d   : > { %483 = vrot.lane.b32.xlu2 %v332_v15, %s1634_s5  ;;  %547 = vrot.lane.b32.xlu0 %v325_v26, %s1635_s6 }
  0x9f   : > { %v346_v27 = vpop.permute.xlu2 %345 }
  0xa0   : > { %v592_v50 = vsel %vm225_vm0, %v1781_v24, %v346_v27 }
  0xa4   : > { %515 = vrot.lane.b32.xlu1 %v317_v29, %s1637_s8 }
  0xa5   : > { %541 = vrot.lane.b32.xlu2 %v1826_v61, %s1635_s6  ;;  %351 = vrot.lane.b32.xlu0 %v321_v11, %s1631_s26 }
  0xa6   : > { %v408_v30 = vpop.permute.xlu1 %407 }
  0xa7   : > { %v442_v31 = vpop.permute.xlu2 %441  ;;  %v536_v33 = vpop.permute.xlu0 %535  ;;  %v609_v37 = vsel %vm608_vm5, %v600_v36, %v408_v30 }
  0xac   : > { %573 = vrot.lane.b32.xlu1 %v1835_v63, %s1638_s9 }
  0xad   : > { %579 = vrot.lane.b32.xlu2 %v333_v34, %s1638_s9  ;;  %389 = vrot.lane.b32.xlu0 %v332_v15, %s1632_s30 }
  0xae   : > { %v440_v38 = vpop.permute.xlu1 %439 }
  0xaf   : > { %v538_v39 = vpop.permute.xlu2 %537  ;;  %v618_v41 = vsel %vm617_vm6, %v609_v37, %v440_v38  ;;  %v378_v42 = vpop.permute.xlu0 %377 }
  0xb0   : > { %v627_v43 = vsel %vm626_vm7, %v618_v41, %v472_v16  ;;  %v601_v53 = vsel %vm599_vm3, %v592_v50, %v378_v42 }
  0xb1   : > { %v636_v44 = vsel %vm635_vm8, %v627_v43, %v504_v23 }
  0xb2   : > { %v645_v45 = vsel %vm644_vm9, %v636_v44, %v536_v33 }
  0xb4   : > { %357 = vrot.lane.b32.xlu1 %v1867_v12, %s1631_s26  ;;  %s1639_s26 = smov 40  }
  0xb5   : > { %383 = vrot.lane.b32.xlu2 %v1855_v5, %s1632_s30  ;;  %447 = vrot.lane.b32.xlu0 %v1826_v61, %s1636_s7 }
  0xb6   : > { %v568_v46 = vpop.permute.xlu1 %567 }
  0xb7   : > { %v354_v47 = vpop.permute.xlu2 %353  ;;  %v654_v48 = vsel %vm653_vm10, %v645_v45, %v568_v46  ;;  %v474_v49 = vpop.permute.xlu0 %473 }
  0xb8   : > { %1475 = vmatmul.msk.f32.vlgmr.msra.gmra.mxu0 %vm667_vm11, %v654_v48  ;;  %v596_v25 = vsel %vm225_vm0, %v1894_v19, %v354_v47 }
  0xbc   : > { %415 = vrot.lane.b32.xlu1 %v1894_v19, %s1633_s4 }
  0xbd   : > { %421 = vrot.lane.b32.xlu2 %v317_v29, %s1633_s4  ;;  %485 = vrot.lane.b32.xlu0 %v333_v34, %s1634_s5  ;;  %s1640_s4 = smov 56  }
  0xbe   : > { %v410_v51 = vpop.permute.xlu1 %409 }
  0xbf   : > { %v412_v52 = vpop.permute.xlu2 %411  ;;  %v570_v54 = vpop.permute.xlu0 %569  ;;  %v610_v55 = vsel %vm608_vm5, %v601_v53, %v410_v51 }
  0xc0   : > { %v619_v56 = vsel %vm617_vm6, %v610_v55, %v442_v31 }
  0xc1   : > { %v628_v24 = vsel %vm626_vm7, %v619_v56, %v474_v49 }
  0xc4   : > { %453 = vrot.lane.b32.xlu1 %v325_v26, %s1636_s7 }
  0xc5   : > { %479 = vrot.lane.b32.xlu2 %v1835_v63, %s1634_s5  ;;  %543 = vrot.lane.b32.xlu0 %v1842_v1, %s1635_s6  ;;  %s1641_s5 = smov 48  }
  0xc6   : > { %v506_v58 = vpop.permute.xlu1 %505 }
  0xc7   : > { %v450_v59 = vpop.permute.xlu2 %449  ;;  %v637_v60 = vsel %vm635_vm8, %v628_v24, %v506_v58  ;;  %v380_v61 = vpop.permute.xlu0 %379 }
  0xc8   : > { %v646_v5 = vsel %vm644_vm9, %v637_v60, %v538_v39 }
  0xc9   : > { %v655_v6 = vsel %vm653_vm10, %v646_v5, %v570_v54 }
  0xca   : > { %1476 = vmatmul.msk.f32.gmra.mxu0 %vm667_vm11, %v655_v6 }
  0xcc   : > { %511 = vrot.lane.b32.xlu1 %v1828_v62, %s1637_s8 }
  0xcd   : > { %517 = vrot.lane.b32.xlu2 %v318_v7, %s1637_s8  ;;  %581 = vrot.lane.b32.xlu0 %v334_v8, %s1638_s9 }
  0xce   : > { %v348_v63 = vpop.permute.xlu1 %347 }
  0xcf   : > { %v508_v1 = vpop.permute.xlu2 %507  ;;  %v418_v9 = vpop.permute.xlu0 %417  ;;  %v593_v17 = vsel %vm225_vm0, %v1795_v40, %v348_v63 }
  0xd0   : > { %v602_v18 = vsel %vm599_vm3, %v593_v17, %v380_v61 }
  0xd1   : > { %v611_v22 = vsel %vm608_vm5, %v602_v18, %v412_v52 }
  0xd4   : > { %549 = vrot.lane.b32.xlu1 %v326_v10, %s1635_s6  ;;  %s1642_s6 = smov 64  }
  0xd5   : > { %575 = vrot.lane.b32.xlu2 %v1851_v3, %s1638_s9 }
  0xd6   : > { %v386_v11 = vpop.permute.xlu1 %385 }
  0xd7   : > { %v546_v12 = vpop.permute.xlu2 %545  ;;  %v476_v13 = vpop.permute.xlu0 %475  ;;  %v605_v26 = vsel %vm599_vm3, %v596_v25, %v386_v11 }
  0xd8   : > { %v614_v28 = vsel %vm608_vm5, %v605_v26, %v418_v9 }
  0xd9   : > { %v623_v31 = vsel %vm617_vm6, %v614_v28, %v450_v59 }
  0xde   : > { %v444_v14 = vpop.permute.xlu1 %443 }
  0xdf   : > { %v350_v15 = vpop.permute.xlu2 %349  ;;  %v514_v16 = vpop.permute.xlu0 %513  ;;  %v620_v3 = vsel %vm617_vm6, %v611_v22, %v444_v14 }
  0xe0   : > { %v629_v27 = vsel %vm626_vm7, %v620_v3, %v476_v13  ;;  %v594_v52 = vsel %vm225_vm0, %v1819_v57, %v350_v15 }
  0xe1   : > { %v638_v40 = vsel %vm635_vm8, %v629_v27, %v508_v1 }
  0xe6   : > { %v482_v20 = vpop.permute.xlu1 %481 }
  0xe7   : > { %v388_v21 = vpop.permute.xlu2 %387  ;;  %v572_v23 = vpop.permute.xlu0 %571  ;;  %v632_v34 = vsel %vm626_vm7, %v623_v31, %v482_v20 }
  0xe8   : > { %v641_v35 = vsel %vm635_vm8, %v632_v34, %v514_v16 }
  0xe9   : > { %v650_v36 = vsel %vm644_vm9, %v641_v35, %v546_v12 }
  0xee   : > { %v540_v29 = vpop.permute.xlu1 %539 }
  0xef   : > { %v446_v30 = vpop.permute.xlu2 %445  ;;  %v647_v32 = vsel %vm644_vm9, %v638_v40, %v540_v29  ;;  %v356_v33 = vpop.permute.xlu0 %355 }
  0xf0   : > { %v656_v19 = vsel %vm653_vm10, %v647_v32, %v572_v23  ;;  %v597_v47 = vsel %vm225_vm0, %v1828_v62, %v356_v33 }
  0xf1   : > { %1477 = vmatmul.msk.f32.gmra.mxu0 %vm667_vm11, %v656_v19  ;;  %v606_v50 = vsel %vm599_vm3, %v597_v47, %v388_v21 }
  0xf6   : > { %v578_v37 = vpop.permute.xlu1 %577 }
  0xf7   : > { %v659_v38 = vsel %vm653_vm10, %v650_v36, %v578_v37  ;;  %v414_v39 = vpop.permute.xlu0 %413  ;;  %v484_v41 = vpop.permute.xlu2 %483 }
  0xf8   : > { %1480 = vmatmul.msk.f32.vlgmr.msra.gmra.mxu3 %vm667_vm11, %v659_v38 }
  0xfe   : > { %v382_v42 = vpop.permute.xlu1 %381 }
  0xff   : > { %v452_v43 = vpop.permute.xlu0 %451  ;;  %v542_v44 = vpop.permute.xlu2 %541  ;;  %v603_v54 = vsel %vm599_vm3, %v594_v52, %v382_v42 }
 0x100   : > { %v612_v56 = vsel %vm608_vm5, %v603_v54, %v414_v39 }
 0x101   : > { %v621_v59 = vsel %vm617_vm6, %v612_v56, %v446_v30 }
 0x106   : > { %v420_v45 = vpop.permute.xlu1 %419 }
 0x107   : > { %v510_v46 = vpop.permute.xlu0 %509  ;;  %v580_v48 = vpop.permute.xlu2 %579  ;;  %v615_v53 = vsel %vm608_vm5, %v606_v50, %v420_v45 }
 0x108   : > { %v624_v55 = vsel %vm617_vm6, %v615_v53, %v452_v43 }
 0x109   : > { %v633_v24 = vsel %vm626_vm7, %v624_v55, %v484_v41 }
 0x10e   : > { %v478_v49 = vpop.permute.xlu1 %477 }
 0x10f   : > { %v548_v51 = vpop.permute.xlu0 %547  ;;  %v384_v62 = vpop.permute.xlu2 %383  ;;  %v630_v5 = vsel %vm626_vm7, %v621_v59, %v478_v49 }
 0x110   : > { %v639_v7 = vsel %vm635_vm8, %v630_v5, %v510_v46 }
 0x111   : > { %v648_v8 = vsel %vm644_vm9, %v639_v7, %v542_v44 }
 0x116   : > { %v516_v58 = vpop.permute.xlu1 %515 }
 0x117   : > { %v642_v60 = vsel %vm635_vm8, %v633_v24, %v516_v58  ;;  %v352_v61 = vpop.permute.xlu0 %351  ;;  %v422_v10 = vpop.permute.xlu2 %421 }
 0x118   : > { %v651_v57 = vsel %vm644_vm9, %v642_v60, %v548_v51  ;;  %v595_v16 = vsel %vm225_vm0, %v1853_v4, %v352_v61 }
 0x119   : > { %v660_v6 = vsel %vm653_vm10, %v651_v57, %v580_v48  ;;  %v604_v20 = vsel %vm599_vm3, %v595_v16, %v384_v62 }
 0x11a   : > { %1481 = vmatmul.msk.f32.gmra.mxu3 %vm667_vm11, %v660_v6 }
 0x11e   : > { %v574_v63 = vpop.permute.xlu1 %573 }
 0x11f   : > { %v657_v1 = vsel %vm653_vm10, %v648_v8, %v574_v63  ;;  %v390_v9 = vpop.permute.xlu0 %389  ;;  %v480_v13 = vpop.permute.xlu2 %479 }
 0x120   : > { %1478 = vmatmul.msk.f32.gmra.mxu0 %vm667_vm11, %v657_v1 }
 0x126   : > { %v358_v11 = vpop.permute.xlu1 %357 }
 0x127   : > { %v448_v12 = vpop.permute.xlu0 %447  ;;  %v518_v17 = vpop.permute.xlu2 %517  ;;  %v598_v22 = vsel %vm225_vm0, %v1844_v2, %v358_v11 }
 0x128   : > { %v607_v3 = vsel %vm599_vm3, %v598_v22, %v390_v9 }
 0x129   : > { %v616_v4 = vsel %vm608_vm5, %v607_v3, %v422_v10 }
 0x12e   : > { %v416_v14 = vpop.permute.xlu1 %415 }
 0x12f   : > { %v486_v15 = vpop.permute.xlu0 %485  ;;  %v613_v21 = vsel %vm608_vm5, %v604_v20, %v416_v14  ;;  %v576_v28 = vpop.permute.xlu2 %575  ;;  %vm1250_vm5 = vcmask 523264  }
 0x130   : > { %v622_v23 = vsel %vm617_vm6, %v613_v21, %v448_v12 }
 0x131   : > { %v631_v26 = vsel %vm626_vm7, %v622_v23, %v480_v13 }
 0x135   : > { %v2023_v36 = vpop.f32.mrf.mxu0 }
 0x136   : > { %v454_v18 = vpop.permute.xlu1 %453  ;;  %v758_v42 = vmul.f32 %v2023_v36, %v2023_v36  ;;  %v737_v46 = vsel %vm599_vm3, %v2023_v36, 0.0 }
 0x137   : > { %v544_v25 = vpop.permute.xlu0 %543  ;;  %v625_v29 = vsel %vm617_vm6, %v616_v4, %v454_v18 }
 0x138   : > { %v634_v2 = vsel %vm626_vm7, %v625_v29, %v486_v15  ;;  %v766_v51 = vsel %vm599_vm3, %v758_v42, 0.0  ;;  %vm1268_vm7 = vcmask 588800  }
 0x139   : > { %v643_v33 = vsel %vm635_vm8, %v634_v2, %v518_v17  ;;  %v870_v2 = vld [vmem:[#allocation3 + $0x1] sm:$0xff] }
 0x13a   : > { %943 = vrot.lane.b32.xlu1 %v870_v2, %s1632_s30 }
 0x13e   : > { %v512_v27 = vpop.permute.xlu1 %511 }
 0x13f   : > { %v640_v40 = vsel %vm635_vm8, %v631_v26, %v512_v27  ;;  %v582_v32 = vpop.permute.xlu0 %581 }
 0x140   : > { %v649_v30 = vsel %vm644_vm9, %v640_v40, %v544_v25 }
 0x141   : > { %v658_v31 = vsel %vm653_vm10, %v649_v30, %v576_v28 }
 0x142   : > { %1479 = vmatmul.msk.f32.gmra.mxu0 %vm667_vm11, %v658_v31 }
 0x146   : > { %v550_v34 = vpop.permute.xlu1 %549 }
 0x147   : > { %v652_v19 = vsel %vm644_vm9, %v643_v33, %v550_v34  ;;  %v2025_v37 = vpop.f32.mrf.mxu0  ;;  %v878_v34 = vld [vmem:[#allocation3 + $0x2] sm:$0xff] }
 0x148   : > { %v661_v35 = vsel %vm653_vm10, %v652_v19, %v582_v32  ;;  %v759_v41 = vmul.f32 %v2025_v37, %v2025_v37  ;;  %v738_v43 = vsel %vm599_vm3, %v2025_v37, 0.0  ;;  %975 = vrot.lane.b32.xlu2 %v878_v34, %s1636_s7  ;;  %v1262_v34 = vld [vmem:[%s2404_s2 + $0x18] sm:$0xff] }
 0x149   : > { %1482 = vmatmul.msk.f32.gmra.mxu3 %vm667_vm11, %v661_v35  ;;  %v739_v50 = vadd.f32 %v738_v43, %v737_v46 }
 0x14a   : > { %v767_v47 = vsel %vm599_vm3, %v759_v41, 0.0 }
 0x14b   : > { %v768_v55 = vadd.f32 %v767_v47, %v766_v51 }
 0x16e   : > { %v2027_v38 = vpop.f32.mrf.mxu0 }
 0x16f   : > { %v760_v44 = vmul.f32 %v2027_v38, %v2027_v38  ;;  %v740_v48 = vsel %vm599_vm3, %v2027_v38, 0.0 }
 0x170   : > { %v741_v56 = vadd.f32 %v740_v48, %v739_v50 }
 0x171   : > { %v769_v52 = vsel %vm599_vm3, %v760_v44, 0.0 }
 0x172   : > { %v770_v59 = vadd.f32 %v769_v52, %v768_v55 }
 0x17b   : > { %v2039_v45 = vpop.f32.mrf.mxu3 }
 0x17c   : > { %v763_v7 = vmul.f32 %v2039_v45, %v2039_v45  ;;  %v746_v63 = vsel %vm599_vm3, %v2039_v45, 0.0 }
 0x17e   : > { %v775_v9 = vsel %vm599_vm3, %v763_v7, 0.0 }
 0x19d   : > { %v2029_v39 = vpop.f32.mrf.mxu0  ;;  %v2060_v57 = vpop.f32.mrf.mxu3 }
 0x19e   : > { %v761_v49 = vmul.f32 %v2029_v39, %v2029_v39  ;;  %v742_v53 = vsel %vm599_vm3, %v2029_v39, 0.0  ;;  %v764_v10 = vmul.f32 %v2060_v57, %v2060_v57  ;;  %v748_v12 = vsel %vm599_vm3, %v2060_v57, 0.0 }
 0x19f   : > { %v743_v60 = vadd.f32 %v742_v53, %v741_v56 }
 0x1a0   : > { %v771_v58 = vsel %vm599_vm3, %v761_v49, 0.0  ;;  %v777_v15 = vsel %vm599_vm3, %v764_v10, 0.0 }
 0x1a1   : > { %v772_v5 = vadd.f32 %v771_v58, %v770_v59 }
 0x1bf   : > { %v2052_v54 = vpop.f32.mrf.mxu0 }
 0x1c0   : > { %v762_v24 = vmul.f32 %v2052_v54, %v2052_v54  ;;  %v744_v62 = vsel %vm599_vm3, %v2052_v54, 0.0 }
 0x1c1   : > { %v745_v6 = vadd.f32 %v744_v62, %v743_v60 }
 0x1c2   : > { %v773_v61 = vsel %vm599_vm3, %v762_v24, 0.0 }
 0x1c3   : > { %v774_v8 = vadd.f32 %v773_v61, %v772_v5  ;;  %v747_v1 = vadd.f32 %v746_v63, %v745_v6 }
 0x1c5   : > { %v776_v11 = vadd.f32 %v775_v9, %v774_v8  ;;  %v749_v14 = vadd.f32 %v748_v12, %v747_v1 }
 0x1c7   : > { %v778_v20 = vadd.f32 %v777_v15, %v776_v11 }
 0x1cc   : > { %v2071_v13 = vpop.f32.mrf.mxu3 }
 0x1cd   : > { %v750_v16 = vsel %vm599_vm3, %v2071_v13, 0.0  ;;  %v765_v17 = vmul.f32 %v2071_v13, %v2071_v13 }
 0x1ce   : > { %v751_v18 = vadd.f32 %v750_v16, %v749_v14 }
 0x1cf   : > { %v779_v21 = vsel %vm599_vm3, %v765_v17, 0.0 }
 0x1d0   : > { %v752_v22 = vrot.slane %v751_v18, 4  ;;  %v780_v23 = vadd.f32 %v779_v21, %v778_v20 }
 0x1d2   : > { %v753_v25 = vadd.f32 %v752_v22, %v751_v18  ;;  %v781_v3 = vrot.slane %v780_v23, 4 }
 0x1d4   : > { %v754_v26 = vrot.slane %v753_v25, 2  ;;  %v782_v27 = vadd.f32 %v781_v3, %v780_v23 }
 0x1d6   : > { %v755_v28 = vadd.f32 %v754_v26, %v753_v25  ;;  %v783_v4 = vrot.slane %v782_v27, 2 }
 0x1d8   : > { %v756_v40 = vrot.slane %v755_v28, 1  ;;  %v784_v29 = vadd.f32 %v783_v4, %v782_v27  ;;  %v976_v27 = vpop.permute.xlu2 %975  ;;  %v1266_v4 = vld [vmem:[%s2404_s2 + $0x38] sm:$0xff] }
 0x1da   : > { %v757_v30 = vadd.f32 %v756_v40, %v755_v28  ;;  %v785_v31 = vrot.slane %v784_v29, 1  ;;  %v1267_v28 = vld [vmem:[%s2404_s2 + $0x40] sm:$0xff] }
 0x1db   : > { %1300 = vmatpush.msra.mxu1 %v1267_v28  ;;  %1501 = vmatpush.msra.mxu2 %v1267_v28 }
 0x1dc   : > { %v786_v32 = vadd.f32 %v785_v31, %v784_v29  ;;  %v787_v33 = vmul.f32 0.015625, %v757_v30  ;;  %v1265_v31 = vld [vmem:[%s2404_s2 + $0x30] sm:$0xff] }
 0x1dd   : > { %1301 = vmatpush.msra.mxu1 %v1266_v4  ;;  %1502 = vmatpush.msra.mxu2 %v1266_v4 }
 0x1de   : > { %v788_v19 = vmul.f32 0.015625, %v786_v32  ;;  %v789_v35 = vmul.f32 %v787_v33, %v787_v33  ;;  %v791_v50 = vsub.f32 %v2023_v36, %v787_v33  ;;  %v792_v51 = vsub.f32 %v2025_v37, %v787_v33  ;;  %v1264_v32 = vld [vmem:[%s2404_s2 + $0x28] sm:$0xff] }
 0x1df   : > { %v794_v52 = vsub.f32 %v2029_v39, %v787_v33  ;;  %v795_v53 = vsub.f32 %v2052_v54, %v787_v33  ;;  %v796_v55 = vsub.f32 %v2039_v45, %v787_v33  ;;  %v798_v0 = vsub.f32 %v2071_v13, %v787_v33  ;;  %1302 = vmatpush.msra.mxu1 %v1265_v31 }
 0x1e0   : > { %v790_v41 = vsub.f32 %v788_v19, %v789_v35  ;;  %v793_v24 = vsub.f32 %v2027_v38, %v787_v33  ;;  %v797_v60 = vsub.f32 %v2060_v57, %v787_v33  ;;  %v1263_v33 = vld [vmem:[%s2404_s2 + $0x20] sm:$0xff]  ;;  %1503 = vmatpush.msra.mxu2 %v1265_v31  ;;  %v1261_v19 = vld [vmem:[%s2404_s2 + $0x10] sm:$0xff] }
 0x1e1   : > { %1303 = vmatpush.msra.mxu1 %v1264_v32 }
 0x1e2   : > { %v799_v42 = vadd.f32 1e-05, %v790_v41  ;;  %1504 = vmatpush.msra.mxu2 %v1264_v32  ;;  %v1260_v41 = vld [vmem:[%s2404_s2 + $0x8] sm:$0xff] }
 0x1e3   : > { %1304 = vmatpush.msra.mxu1 %v1263_v33 }
 0x1e4   : > { %1562 = vrsqrt.f32 %v799_v42  ;;  %vm806_vm15 = vweird.f32 %v799_v42  ;;  %1505 = vmatpush.msra.mxu2 %v1263_v33 }
 0x1e5   : > { %1305 = vmatpush.msra.mxu1 %v1262_v34 }
 0x1e6   : > { %1506 = vmatpush.msra.mxu2 %v1262_v34 }
 0x1e7   : > { %1306 = vmatpush.msra.mxu1 %v1261_v19 }
 0x1e8   : > { %1507 = vmatpush.msra.mxu2 %v1261_v19 }
 0x1e9   : > { %1307 = vmatpush.msra.mxu1 %v1260_v41 }
 0x1ea   : > { %v1563_v43 = vpop.eup %1562  ;;  %1508 = vmatpush.msra.mxu2 %v1260_v41 }
 0x1eb   : > { %v801_v44 = vmul.f32 %v1563_v43, %v799_v42  ;;  %vm807_vm14 = vweird.f32 %v1563_v43  ;;  %v1259_v42 = vld [vmem:[%s2404_s2] sm:$0xff] }
 0x1ec   : > { %vm808_vm0 = vmor %vm806_vm15, %vm807_vm14  ;;  %1308 = vmatpush.msra.mxu1 %v1259_v42  ;;  %1509 = vmatpush.msra.mxu2 %v1259_v42 }
 0x1ed   : > { %v802_v46 = vmul.f32 %v1563_v43, %v801_v44 }
 0x1ef   : > { %v803_v47 = vmul.f32 0.5, %v802_v46  ;;  %v862_v46 = vld [vmem:[#allocation3] sm:$0xff] }
 0x1f1   : > { %v804_v48 = vsub.f32 1.5, %v803_v47 }
 0x1f3   : > { %v805_v49 = vmul.f32 %v1563_v43, %v804_v48 }
 0x1f5   : > { %v809_v56 = vsel %vm808_vm0, %v1563_v43, %v805_v49  ;;  %v944_v43 = vpop.permute.xlu1 %943 }
 0x1f6   : > { %v810_v58 = vmul.f32 %v809_v56, %v791_v50  ;;  %v811_v62 = vmul.f32 %v809_v56, %v792_v51  ;;  %v813_v59 = vmul.f32 %v809_v56, %v794_v52  ;;  %v814_v36 = vmul.f32 %v809_v56, %v795_v53 }
 0x1f7   : > { %v815_v61 = vmul.f32 %v809_v56, %v796_v55  ;;  %v817_v37 = vmul.f32 %v809_v56, %v798_v0  ;;  %v812_v5 = vmul.f32 %v809_v56, %v793_v24  ;;  %v816_v7 = vmul.f32 %v809_v56, %v797_v60 }
 0x1f8   : > { %v818_v39 = vmax.f32 %v810_v58, 0.0  ;;  %v819_v6 = vmax.f32 %v811_v62, 0.0  ;;  %v821_v8 = vmax.f32 %v813_v59, 0.0  ;;  %v822_v45 = vmax.f32 %v814_v36, 0.0 }
 0x1f9   : > { %v825_v54 = vmax.f32 %v817_v37, 0.0  ;;  %v823_v38 = vmax.f32 %v815_v61, 0.0  ;;  %v820_v63 = vmax.f32 %v812_v5, 0.0  ;;  %v824_v57 = vmax.f32 %v816_v7, 0.0 }
 0x1fa   : > { %854 = vst.msk [vmem:[#allocation3 + $0x11] sm:$0xff] %vm599_vm3, %v818_v39  ;;  %v1191_v50 = vsel %vm599_vm3, %v862_v46, %v944_v43 }
 0x1fb   : > { %861 = vst.msk [vmem:[#allocation3 + $0x81] sm:$0xff] %vm599_vm3, %v825_v54  ;;  %v1199_v51 = vsel %vm617_vm6, %v1191_v50, %v976_v27 }
 0x1fc   : > { %855 = vst.msk [vmem:[#allocation3 + $0x21] sm:$0xff] %vm599_vm3, %v819_v6 }
 0x1fd   : > { %857 = vst.msk [vmem:[#allocation3 + $0x41] sm:$0xff] %vm599_vm3, %v821_v8 }
 0x1fe   : > { %858 = vst.msk [vmem:[#allocation3 + $0x51] sm:$0xff] %vm599_vm3, %v822_v45 }
 0x1ff   : > { %859 = vst.msk [vmem:[#allocation3 + $0x61] sm:$0xff] %vm599_vm3, %v823_v38  ;;  %v918_v38 = vld [vmem:[#allocation3 + $0x90] sm:$0xff] }
 0x200   : > { %856 = vst.msk [vmem:[#allocation3 + $0x31] sm:$0xff] %vm599_vm3, %v820_v63 }
 0x201   : > { %v902_v1 = vld [vmem:[#allocation3 + $0x12] sm:$0xff]  ;;  %860 = vst.msk [vmem:[#allocation3 + $0x71] sm:$0xff] %vm599_vm3, %v824_v57 }
 0x202   : > { %v894_v9 = vld [vmem:[#allocation3 + $0x11] sm:$0xff]  ;;  %1071 = vrot.lane.b32.xlu2 %v902_v1, %s1639_s26  ;;  %v917_v52 = vld [vmem:[#allocation3 + $0x80] sm:$0xff] }
 0x203   : > { %v2138_v10 = vld [vmem:[#allocation3 + $0x10] sm:$0xff]  ;;  %1039 = vrot.lane.b32.xlu1 %v894_v9, %s1638_s9  ;;  %v919_v11 = vld [vmem:[#allocation3 + $0x21] sm:$0xff] }
 0x204   : > { %1007 = vrot.lane.b32.xlu0 %v2138_v10, %s1637_s8  ;;  %v2145_v12 = vld [vmem:[#allocation3 + $0x41] sm:$0xff] }
 0x205   : > { %v2150_v13 = vld [vmem:[#allocation3 + $0x20] sm:$0xff]  ;;  %v2160_v16 = vld [vmem:[#allocation3 + $0x51] sm:$0xff] }
 0x206   : > { %v927_v14 = vld [vmem:[#allocation3 + $0x22] sm:$0xff]  ;;  %v2162_v17 = vld [vmem:[#allocation3 + $0x50] sm:$0xff] }
 0x207   : > { %v2155_v15 = vld [vmem:[#allocation3 + $0x42] sm:$0xff]  ;;  %v2169_v18 = vld [vmem:[#allocation3 + $0x52] sm:$0xff] }
 0x208   : > { %v923_v20 = vld [vmem:[#allocation3 + $0x61] sm:$0xff]  ;;  %v2182_v23 = vld [vmem:[#allocation3 + $0x30] sm:$0xff] }
 0x209   : > { %v2176_v21 = vld [vmem:[#allocation3 + $0x60] sm:$0xff]  ;;  %v928_v25 = vld [vmem:[#allocation3 + $0x32] sm:$0xff] }
 0x20a   : > { %1135 = vrot.lane.b32.xlu2 %v919_v11, %s1640_s4  ;;  %v931_v22 = vld [vmem:[#allocation3 + $0x62] sm:$0xff]  ;;  %v920_v3 = vld [vmem:[#allocation3 + $0x31] sm:$0xff] }
 0x20b   : > { %951 = vrot.lane.b32.xlu1 %v2145_v12, %s1632_s30  ;;  %v2201_v26 = vld [vmem:[#allocation3 + $0x70] sm:$0xff]  ;;  %v2213_v40 = vld [vmem:[#allocation3 + $0x40] sm:$0xff] }
 0x20c   : > { %1103 = vrot.lane.b32.xlu0 %v2150_v13, %s1641_s5  ;;  %v2215_v29 = vld [vmem:[#allocation3 + $0x72] sm:$0xff]  ;;  %v925_v59 = vld [vmem:[#allocation3 + $0x81] sm:$0xff] }
 0x20d   : > { %v2217_v30 = vld [vmem:[#allocation3 + $0x71] sm:$0xff]  ;;  %v933_v39 = vld [vmem:[#allocation3 + $0x82] sm:$0xff] }
 0x212   : > { %945 = vrot.lane.b32.xlu2 %v894_v9, %s1632_s30 }
 0x213   : > { %1167 = vrot.lane.b32.xlu1 %v927_v14, %s1642_s6 }
 0x214   : > { %983 = vrot.lane.b32.xlu0 %v2155_v15, %s1636_s7 }
 0x21a   : > { %1047 = vrot.lane.b32.xlu2 %v2160_v16, %s1638_s9 }
 0x21b   : > { %977 = vrot.lane.b32.xlu1 %v902_v1, %s1636_s7 }
 0x21c   : > { %1015 = vrot.lane.b32.xlu0 %v2162_v17, %s1637_s8 }
 0x222   : > { %1041 = vrot.lane.b32.xlu2 %v919_v11, %s1638_s9 }
 0x223   : > { %1079 = vrot.lane.b32.xlu1 %v2169_v18, %s1639_s26 }
 0x224   : > { %1009 = vrot.lane.b32.xlu0 %v2150_v13, %s1637_s8 }
 0x22a   : > { %1143 = vrot.lane.b32.xlu2 %v923_v20, %s1640_s4 }
 0x22b   : > { %1073 = vrot.lane.b32.xlu1 %v927_v14, %s1639_s26 }
 0x22c   : > { %1111 = vrot.lane.b32.xlu0 %v2176_v21, %s1641_s5 }
 0x232   : > { %953 = vrot.lane.b32.xlu2 %v2160_v16, %s1632_s30 }
 0x233   : > { %1175 = vrot.lane.b32.xlu1 %v931_v22, %s1642_s6 }
 0x234   : > { %1105 = vrot.lane.b32.xlu0 %v2182_v23, %s1641_s5 }
 0x23a   : > { %1169 = vrot.lane.b32.xlu2 %v928_v25, %s1642_s6 }
 0x23b   : > { %985 = vrot.lane.b32.xlu1 %v2169_v18, %s1636_s7 }
 0x23c   : > { %1137 = vrot.lane.b32.xlu0 %v920_v3, %s1640_s4 }
 0x242   : > { %979 = vrot.lane.b32.xlu2 %v927_v14, %s1636_s7 }
 0x243   : > { %1017 = vrot.lane.b32.xlu1 %v2176_v21, %s1637_s8 }
 0x244   : > { %947 = vrot.lane.b32.xlu0 %v919_v11, %s1632_s30 }
 0x24a   : > { %1081 = vrot.lane.b32.xlu2 %v931_v22, %s1639_s26 }
 0x24b   : > { %1011 = vrot.lane.b32.xlu1 %v2182_v23, %s1637_s8 }
 0x24c   : > { %1049 = vrot.lane.b32.xlu0 %v923_v20, %s1638_s9 }
 0x252   : > { %1075 = vrot.lane.b32.xlu2 %v928_v25, %s1639_s26 }
 0x253   : > { %1113 = vrot.lane.b32.xlu1 %v2201_v26, %s1641_s5 }
 0x254   : > { %1043 = vrot.lane.b32.xlu0 %v920_v3, %s1638_s9 }
 0x25a   : > { %1177 = vrot.lane.b32.xlu2 %v2215_v29, %s1642_s6 }
 0x25b   : > { %1107 = vrot.lane.b32.xlu1 %v2213_v40, %s1641_s5 }
 0x25c   : > { %1145 = vrot.lane.b32.xlu0 %v2217_v30, %s1640_s4  ;;  %v1072_v2 = vpop.permute.xlu2 %1071 }
 0x262   : > { %987 = vrot.lane.b32.xlu2 %v931_v22, %s1636_s7 }
 0x263   : > { %1139 = vrot.lane.b32.xlu1 %v2145_v12, %s1640_s4 }
 0x264   : > { %955 = vrot.lane.b32.xlu0 %v923_v20, %s1632_s30  ;;  %v1136_v35 = vpop.permute.xlu2 %1135 }
 0x26a   : > { %1019 = vrot.lane.b32.xlu2 %v2201_v26, %s1637_s8 }
 0x26b   : > { %949 = vrot.lane.b32.xlu1 %v920_v3, %s1632_s30 }
 0x26c   : > { %1171 = vrot.lane.b32.xlu0 %v2155_v15, %s1642_s6  ;;  %v2255_v44 = vpop.permute.xlu2 %945 }
 0x26d   : > { %v1192_v28 = vsel %vm599_vm3, %v2138_v10, %v2255_v44 }
 0x272   : > { %1013 = vrot.lane.b32.xlu2 %v2213_v40, %s1637_s8 }
 0x273   : > { %1051 = vrot.lane.b32.xlu1 %v2217_v30, %s1638_s9 }
 0x274   : > { %981 = vrot.lane.b32.xlu0 %v928_v25, %s1636_s7  ;;  %v1048_v48 = vpop.permute.xlu2 %1047 }
 0x275   : > { %v1040_v47 = vpop.permute.xlu1 %1039 }
 0x276   : > { %v1008_v49 = vpop.permute.xlu0 %1007 }
 0x277   : > { %v1207_v53 = vsel %vm635_vm8, %v1199_v51, %v1008_v49 }
 0x278   : > { %v1215_v0 = vsel %vm653_vm10, %v1207_v53, %v1040_v47 }
 0x279   : > { %v1224_v58 = vsel %vm1223_vm1, %v1215_v0, %v1072_v2 }
 0x27a   : > { %1115 = vrot.lane.b32.xlu2 %v917_v52, %s1641_s5 }
 0x27b   : > { %1045 = vrot.lane.b32.xlu1 %v2145_v12, %s1638_s9 }
 0x27c   : > { %1083 = vrot.lane.b32.xlu0 %v2215_v29, %s1639_s26  ;;  %v1042_v24 = vpop.permute.xlu2 %1041 }
 0x27d   : > { %v952_v55 = vpop.permute.xlu1 %951 }
 0x27e   : > { %v1104_v56 = vpop.permute.xlu0 %1103  ;;  %v1195_v63 = vsel %vm599_vm3, %v2213_v40, %v952_v55 }
 0x27f   : > { %v1233_v62 = vsel %vm1232_vm2, %v1224_v58, %v1104_v56 }
 0x280   : > { %v1242_v36 = vsel %vm1241_vm4, %v1233_v62, %v1136_v35 }
 0x282   : > { %1109 = vrot.lane.b32.xlu2 %v2162_v17, %s1641_s5 }
 0x283   : > { %1147 = vrot.lane.b32.xlu1 %v925_v59, %s1640_s4 }
 0x284   : > { %1077 = vrot.lane.b32.xlu0 %v2155_v15, %s1639_s26  ;;  %v1144_v5 = vpop.permute.xlu2 %1143  ;;  %v934_v15 = vld [vmem:[#allocation3 + $0x92] sm:$0xff] }
 0x285   : > { %v1168_v60 = vpop.permute.xlu1 %1167 }
 0x286   : > { %v984_v61 = vpop.permute.xlu0 %983  ;;  %v1251_v37 = vsel %vm1250_vm5, %v1242_v36, %v1168_v60 }
 0x287   : > { %1483 = vmatmul.msk.f32.vlgmr.msra.gmra.mxu1 %vm1268_vm7, %v1251_v37  ;;  %v1203_v57 = vsel %vm617_vm6, %v1195_v63, %v984_v61 }
 0x28a   : > { %1141 = vrot.lane.b32.xlu2 %v2160_v16, %s1640_s4 }
 0x28b   : > { %957 = vrot.lane.b32.xlu1 %v2217_v30, %s1632_s30  ;;  %s161_s30 = sand.u32 1, %s1620_s13  }
 0x28c   : > { %1179 = vrot.lane.b32.xlu0 %v933_v39, %s1642_s6  ;;  %v954_v54 = vpop.permute.xlu2 %953 }
 0x28d   : > { %v978_v6 = vpop.permute.xlu1 %977  ;;  %v1196_v49 = vsel %vm599_vm3, %v2162_v17, %v954_v54 }
 0x28e   : > { %v1016_v7 = vpop.permute.xlu0 %1015  ;;  %v1200_v40 = vsel %vm617_vm6, %v1192_v28, %v978_v6 }
 0x28f   : > { %v1211_v1 = vsel %vm635_vm8, %v1203_v57, %v1016_v7 }
 0x290   : > { %v1219_v14 = vsel %vm653_vm10, %v1211_v1, %v1048_v48 }
 0x292   : > { %1021 = vrot.lane.b32.xlu2 %v917_v52, %s1637_s8  ;;  %s1492_s8 = sshll.u32 %s1684_s16, 3  ;;  %s1393_s16 = scalar_lea.sflag [#allocation5], %s161_s30 }
 0x293   : > { %1173 = vrot.lane.b32.xlu1 %v2169_v18, %s1642_s6  ;;  %v926_v18 = vld [vmem:[#allocation3 + $0x91] sm:$0xff] }
 0x294   : > { %989 = vrot.lane.b32.xlu0 %v2215_v29, %s1636_s7  ;;  %v1170_v9 = vpop.permute.xlu2 %1169  ;;  %s1471_s7 = sshll.u32 %s161_s30, 3 }
 0x295   : > { %v1080_v8 = vpop.permute.xlu1 %1079 }
 0x296   : > { %v1010_v45 = vpop.permute.xlu0 %1009  ;;  %v1228_v16 = vsel %vm1223_vm1, %v1219_v14, %v1080_v8 }
 0x297   : > { %v1208_v29 = vsel %vm635_vm8, %v1200_v40, %v1010_v45 }
 0x298   : > { %v1216_v30 = vsel %vm653_vm10, %v1208_v29, %v1042_v24 }
 0x29a   : > { %1117 = vrot.lane.b32.xlu2 %v918_v38, %s1641_s5  ;;  %s163_s5 = scalar_lea.vmem [#allocation4], %s1471_s7 }
 0x29b   : > { %1085 = vrot.lane.b32.xlu1 %v933_v39, %s1639_s26 }
 0x29c   : > { %1053 = vrot.lane.b32.xlu0 %v925_v59, %s1638_s9  ;;  %v980_v4 = vpop.permute.xlu2 %979 }
 0x29d   : > { %v1074_v11 = vpop.permute.xlu1 %1073 }
 0x29e   : > { %v1112_v12 = vpop.permute.xlu0 %1111  ;;  %v1225_v31 = vsel %vm1223_vm1, %v1216_v30, %v1074_v11 }
 0x29f   : > { %v1237_v20 = vsel %vm1232_vm2, %v1228_v16, %v1112_v12 }
 0x2a0   : > { %v1246_v25 = vsel %vm1241_vm4, %v1237_v20, %v1144_v5 }
 0x2a3   : > { %1181 = vrot.lane.b32.xlu1 %v934_v15, %s1642_s6  ;;  %s1405_s6 = sshll.u32 %s163_s5, 4  ;;  %s1406_s6 = int_to_ptr.vmem [resolvable:$true] %s1405_s6 }
 0x2a4   : > { %1149 = vrot.lane.b32.xlu0 %v926_v18, %s1640_s4  ;;  %v1082_v10 = vpop.permute.xlu2 %1081  ;;  %s1403_s4 = scalar_lea.hbm %s2405_s3, %s1492_s8 }
 0x2a5   : > { %v1176_v22 = vpop.permute.xlu1 %1175  ;;  %s1407_s28 = sshll.u32 %s1403_s4, 4  ;;  %s1408_s28 = int_to_ptr.hbm [resolvable:$true] %s1407_s28 }
 0x2a6   : > { %v1106_v3 = vpop.permute.xlu0 %1105  ;;  %v1255_v27 = vsel %vm1250_vm5, %v1246_v25, %v1176_v22  ;;  %s1580_s29 = sshra.s32 %s1408_s28, 4  ;;  %s1581_s29 = int_to_ptr.hbm [resolvable:$true] %s1580_s29 }
 0x2a7   : > { %1487 = vmatmul.msk.f32.vlgmr.msra.gmra.mxu2 %vm1268_vm7, %v1255_v27  ;;  %v1234_v32 = vsel %vm1232_vm2, %v1225_v31, %v1106_v3  ;;  %s1582_s10 = scalar_lea.hbm %s1581_s29, 8  ;;  %p1587_p0 = scmp.lt.s32.totalorder %s1581_s29, %s2405_s3 }
 0x2a8   : > { %p1583_p11 = scmp.ne.s32.totalorder %s1581_s29, %s1582_s10  ;;  %p1588_p1 = scmp.lt.s32.totalorder %s1586_s19, %s1582_s10 }
 0x2aa   : > { %p1584_p12 = pnand %p1583_p11, %p1701_p5  ;;  %p1589_p2 = por %p1588_p1, %p1587_p0 }
 0x2ac   : > { %v1076_v42 = vpop.permute.xlu2 %1075  ;;  %p1585_p13 = pneg %p1584_p12 }
 0x2ad   : > { %v986_v2 = vpop.permute.xlu1 %985 }
 0x2ae   : > { %v1138_v33 = vpop.permute.xlu0 %1137  ;;  %v1204_v50 = vsel %vm617_vm6, %v1196_v49, %v986_v2  ;;  %p1590_p3 = pnand %p1589_p2, %p1585_p13 }
 0x2af   : > { %v1243_v34 = vsel %vm1241_vm4, %v1234_v32, %v1138_v33 }
 0x2b0   : > { %v1252_v19 = vsel %vm1250_vm5, %v1243_v34, %v1170_v9 }
 0x2b1   : > { %1484 = vmatmul.msk.f32.gmra.mxu1 %vm1268_vm7, %v1252_v19 }
 0x2b4   : > { %v1178_v46 = vpop.permute.xlu2 %1177 }
 0x2b5   : > { %v1018_v35 = vpop.permute.xlu1 %1017 }
 0x2b6   : > { %v948_v41 = vpop.permute.xlu0 %947  ;;  %v1212_v51 = vsel %vm635_vm8, %v1204_v50, %v1018_v35 }
 0x2b7   : > { %v1193_v17 = vsel %vm599_vm3, %v2150_v13, %v948_v41 }
 0x2b8   : > { %v1201_v36 = vsel %vm617_vm6, %v1193_v17, %v980_v4 }
 0x2bc   : > { %v988_v24 = vpop.permute.xlu2 %987 }
 0x2bd   : > { %v1012_v43 = vpop.permute.xlu1 %1011 }
 0x2be   : > { %v1050_v44 = vpop.permute.xlu0 %1049  ;;  %v1209_v61 = vsel %vm635_vm8, %v1201_v36, %v1012_v43 }
 0x2bf   : > { %v1220_v52 = vsel %vm653_vm10, %v1212_v51, %v1050_v44 }
 0x2c0   : > { %v1229_v53 = vsel %vm1223_vm1, %v1220_v52, %v1082_v10 }
 0x2c4   : > { %v1020_v5 = vpop.permute.xlu2 %1019 }
 0x2c5   : > { %v1114_v47 = vpop.permute.xlu1 %1113 }
 0x2c6   : > { %v1044_v48 = vpop.permute.xlu0 %1043  ;;  %v1238_v0 = vsel %vm1232_vm2, %v1229_v53, %v1114_v47 }
 0x2c7   : > { %v1217_v37 = vsel %vm653_vm10, %v1209_v61, %v1044_v48 }
 0x2c8   : > { %v1226_v39 = vsel %vm1223_vm1, %v1217_v37, %v1076_v42 }
 0x2cc   : > { %v1014_v13 = vpop.permute.xlu2 %1013 }
 0x2cd   : > { %v1108_v55 = vpop.permute.xlu1 %1107 }
 0x2ce   : > { %v1146_v56 = vpop.permute.xlu0 %1145  ;;  %v1235_v6 = vsel %vm1232_vm2, %v1226_v39, %v1108_v55 }
 0x2cf   : > { %v1247_v58 = vsel %vm1241_vm4, %v1238_v0, %v1146_v56 }
 0x2d0   : > { %v1256_v62 = vsel %vm1250_vm5, %v1247_v58, %v1178_v46 }
 0x2d1   : > { %1488 = vmatmul.msk.f32.gmra.mxu2 %vm1268_vm7, %v1256_v62 }
 0x2d4   : > { %v1116_v57 = vpop.permute.xlu2 %1115 }
 0x2d5   : > { %v1140_v59 = vpop.permute.xlu1 %1139 }
 0x2d6   : > { %v956_v60 = vpop.permute.xlu0 %955  ;;  %v1244_v54 = vsel %vm1241_vm4, %v1235_v6, %v1140_v59 }
 0x2d7   : > { %v1197_v11 = vsel %vm599_vm3, %v2176_v21, %v956_v60 }
 0x2d8   : > { %v1205_v12 = vsel %vm617_vm6, %v1197_v11, %v988_v24 }
 0x2d9   : > { %v1213_v18 = vsel %vm635_vm8, %v1205_v12, %v1020_v5 }
 0x2dc   : > { %v1110_v16 = vpop.permute.xlu2 %1109 }
 0x2dd   : > { %v950_v7 = vpop.permute.xlu1 %949 }
 0x2de   : > { %v1172_v8 = vpop.permute.xlu0 %1171  ;;  %v1194_v20 = vsel %vm599_vm3, %v2182_v23, %v950_v7 }
 0x2df   : > { %v1253_v45 = vsel %vm1250_vm5, %v1244_v54, %v1172_v8 }
 0x2e0   : > { %1485 = vmatmul.msk.f32.gmra.mxu1 %vm1268_vm7, %v1253_v45 }
 0x2e4   : > { %v1142_v31 = vpop.permute.xlu2 %1141 }
 0x2e5   : > { %v1052_v38 = vpop.permute.xlu1 %1051 }
 0x2e6   : > { %v982_v63 = vpop.permute.xlu0 %981  ;;  %v1221_v22 = vsel %vm653_vm10, %v1213_v18, %v1052_v38 }
 0x2e7   : > { %v1202_v25 = vsel %vm617_vm6, %v1194_v20, %v982_v63 }
 0x2e8   : > { %v1210_v27 = vsel %vm635_vm8, %v1202_v25, %v1014_v13 }
 0x2ec   : > { %v1022_v35 = vpop.permute.xlu2 %1021 }
 0x2ed   : > { %v1046_v1 = vpop.permute.xlu1 %1045 }
 0x2ee   : > { %v1084_v9 = vpop.permute.xlu0 %1083  ;;  %v1218_v4 = vsel %vm653_vm10, %v1210_v27, %v1046_v1 }
 0x2ef   : > { %v1230_v3 = vsel %vm1223_vm1, %v1221_v22, %v1084_v9 }
 0x2f0   : > { %v1239_v21 = vsel %vm1232_vm2, %v1230_v3, %v1116_v57 }
 0x2f4   : > { %v1118_v49 = vpop.permute.xlu2 %1117 }
 0x2f5   : > { %v1148_v14 = vpop.permute.xlu1 %1147 }
 0x2f6   : > { %v1078_v15 = vpop.permute.xlu0 %1077  ;;  %v1248_v40 = vsel %vm1241_vm4, %v1239_v21, %v1148_v14 }
 0x2f7   : > { %v1227_v30 = vsel %vm1223_vm1, %v1218_v4, %v1078_v15 }
 0x2f8   : > { %v1236_v2 = vsel %vm1232_vm2, %v1227_v30, %v1110_v16 }
 0x2f9   : > { %v1245_v34 = vsel %vm1241_vm4, %v1236_v2, %v1142_v31 }
 0x2fd   : > { %v958_v28 = vpop.permute.xlu1 %957 }
 0x2fe   : > { %v1180_v29 = vpop.permute.xlu0 %1179  ;;  %v1198_v41 = vsel %vm599_vm3, %v2201_v26, %v958_v28 }
 0x2ff   : > { %v1257_v23 = vsel %vm1250_vm5, %v1248_v40, %v1180_v29 }
 0x300   : > { %1489 = vmatmul.msk.f32.gmra.mxu2 %vm1268_vm7, %v1257_v23 }
 0x304   : > { %v1310_v32 = vpop.f32.mrf.mxu1 }
 0x305   : > { %v1174_v33 = vpop.permute.xlu1 %1173  ;;  %1334 = vxpose.xlu2.b32.start [1/8] (short) (narrow) %v1310_v32, 8 }
 0x306   : > { %v990_v19 = vpop.permute.xlu0 %989  ;;  %v1254_v10 = vsel %vm1250_vm5, %v1245_v34, %v1174_v33 }
 0x307   : > { %1486 = vmatmul.msk.f32.gmra.mxu1 %vm1268_vm7, %v1254_v10  ;;  %v1206_v42 = vsel %vm617_vm6, %v1198_v41, %v990_v19 }
 0x308   : > { %v1214_v46 = vsel %vm635_vm8, %v1206_v42, %v1022_v35 }
 0x30d   : > { %v1086_v43 = vpop.permute.xlu1 %1085 }
 0x30e   : > { %v1054_v44 = vpop.permute.xlu0 %1053 }
 0x30f   : > { %v1222_v47 = vsel %vm653_vm10, %v1214_v46, %v1054_v44 }
 0x310   : > { %v1231_v48 = vsel %vm1223_vm1, %v1222_v47, %v1086_v43 }
 0x311   : > { %v1240_v51 = vsel %vm1232_vm2, %v1231_v48, %v1118_v49 }
 0x315   : > { %v1182_v50 = vpop.permute.xlu1 %1181 }
 0x316   : > { %v1150_v52 = vpop.permute.xlu0 %1149 }
 0x317   : > { %v1249_v53 = vsel %vm1241_vm4, %v1240_v51, %v1150_v52 }
 0x318   : > { %v1258_v55 = vsel %vm1250_vm5, %v1249_v53, %v1182_v50 }
 0x319   : > { %1490 = vmatmul.msk.f32.gmra.mxu2 %vm1268_vm7, %v1258_v55 }
 0x32a   : > { %v1322_v24 = vpop.f32.mrf.mxu2 }
 0x32e   : > { %v1313_v26 = vpop.f32.mrf.mxu1 }
 0x32f   : > { %1335 = vxpose.xlu2.b32.cont [2/8] (short) (narrow) %v1313_v26, 8 }
 0x354   : > { %v1325_v58 = vpop.f32.mrf.mxu2 }
 0x35d   : > { %v1316_v0 = vpop.f32.mrf.mxu1 }
 0x35e   : > { %1336 = vxpose.xlu2.b32.cont [3/8] (short) (narrow) %v1316_v0, 8 }
 0x383   : > { %v1328_v62 = vpop.f32.mrf.mxu2 }
 0x384   : > { %v1319_v56 = vpop.f32.mrf.mxu1 }
 0x385   : > { %1337 = vxpose.xlu2.b32.cont [4/8] (short) (narrow) %v1319_v56, 8 }
 0x38d   : > { %1338 = vxpose.xlu2.b32.cont [5/8] (short) (narrow) %v1322_v24, 8 }
 0x395   : > { %1339 = vxpose.xlu2.b32.cont [6/8] (short) (narrow) %v1325_v58, 8 }
 0x39c   : > { %v1331_v17 = vpop.f32.mrf.mxu2 }
 0x39d   : > { %1340 = vxpose.xlu2.b32.cont [7/8] (short) (narrow) %v1328_v62, 8 }
 0x3a5   : > { %1341 = vxpose.xlu2.b32.end [8/8] (short) (narrow) %v1331_v17, 8 }
 0x406   : > { %v1350_v59 = vpop.trf.xlu2 }
 0x407   : > { %v1369_v60 = vmul.f32 %v1350_v59, %v1350_v59  ;;  %v1366_v36 = vsel %vm1250_vm5, %v1350_v59, 0.0 }
 0x408   : > { %1367 = vadd.xlane.f32.xlu0 %v1366_v36 }
 0x409   : > { %v1370_v61 = vsel %vm1250_vm5, %v1369_v60, 0.0 }
 0x40a   : > { %1371 = vadd.xlane.f32.xlu1 %v1370_v61 }
 0x47b   : > { %v1368_v37 = vpop.xlane.xlu0 %1367 }
 0x47c   : > { %v1373_v5 = vmul.f32 0.015625, %v1368_v37 }
 0x47d   : > { %v1372_v39 = vpop.xlane.xlu1 %1371 }
 0x47e   : > { %v1375_v6 = vmul.f32 %v1373_v5, %v1373_v5  ;;  %v1374_v7 = vmul.f32 0.015625, %v1372_v39  ;;  %v1377_v9 = vsub.f32 %v1350_v59, %v1373_v5 }
 0x480   : > { %v1376_v54 = vsub.f32 %v1374_v7, %v1375_v6 }
 0x482   : > { %v1378_v8 = vadd.f32 1e-05, %v1376_v54 }
 0x484   : > { %1564 = vrsqrt.f32 %v1378_v8  ;;  %vm1385_vm6 = vweird.f32 %v1378_v8 }
 0x48a   : > { %v1565_v45 = vpop.eup %1564 }
 0x48b   : > { %v1380_v13 = vmul.f32 %v1565_v45, %v1378_v8  ;;  %vm1386_vm3 = vweird.f32 %v1565_v45 }
 0x48c   : > { %vm1387_vm8 = vmor %vm1385_vm6, %vm1386_vm3 }
 0x48d   : > { %v1381_v38 = vmul.f32 %v1565_v45, %v1380_v13 }
 0x48f   : > { %v1382_v63 = vmul.f32 0.5, %v1381_v38 }
 0x491   : > { %v1383_v57 = vsub.f32 1.5, %v1382_v63 }
 0x493   : > { %v1384_v1 = vmul.f32 %v1565_v45, %v1383_v57 }
 0x495   : > { %v1388_v11 = vsel %vm1387_vm8, %v1565_v45, %v1384_v1 }
 0x496   : > { %v1389_v12 = vmul.f32 %v1388_v11, %v1377_v9 }
 0x498   : > { %v1390_v14 = vmax.f32 %v1389_v12, 0.0 }
 0x49a   : > { %1391 = vst.msk [vmem:[%s163_s5] sm:$0xff] %vm1250_vm5, %v1390_v14 }
 0x49b   : > { %1593 = shalt.err (!%p1590_p3)
}
 0x49c   : > { %1510 = dma.vmem_to_hbm [thread:$0]  (%p1701_p5), %s1406_s6, 128, %s1408_s28, %s1393_s16  }
 0x49d PF: > { %p1516_p4 = scmp.ge.s32.totalorder %s1628_s15, 2  ;;  %s1419_s25 = sand.u32 1, %s1616_s12  }
 0x49e   : > { %s1420_s27 = scalar_lea.sflag [#allocation5], %s1419_s25 }
 0x49f   : > { %p1513_p7 = pnand %p1516_p4, %p1705_p6 }
 0x4a1   : > { %p1514_p8 = pneg %p1513_p7 }
 0x4a3   : > { %1611 = dma.done.wait (%p1514_p8), %s1420_s27, 128  }
 0x4a4   : > { %1613 = vsyncadd (%p1514_p8), %s1420_s27, 4294967168  ;;  %p13_p9 = scmp.ge.s32.totalorder %s1688_s18, 4   ;;  %s2408_s12 = smov %s1620_s13 }
 0x4a5   : > { %s2409_s13 = smov %s1624_s14  ;;  %s2410_s14 = smov %s1699_s21 }
 0x4a6   : > { %s2411_s15 = smov %s1688_s18  ;;  %15 = sbr.rel (!%p13_p9) target bundleno = 3 (0x3), region = 73 }
 0x4ab   :  { %1426 = vsyncpa [#allocation5], 1 }
 0x4ac   :  { %1428 = vsyncpa [#allocation5 + $0x1], 1 }

</bundles_post_ra>
